<compile_context>
chip_gen: v6e
topology: v6e:2x2x1
jax: 0.10.0
libtpu: 0.0.40
codegen_flags: <defaults>
</compile_context>

<pallas_src>
import functools

import jax
import jax.numpy as jnp
from jax.experimental import pallas as pl
from jax.experimental.pallas import tpu as pltpu


def _round_up(n, m):
    return ((n + m - 1) // m) * m


def _pad_width(d, mxu_align=256):
    """Lane-dense padded width for an MXU-facing dimension.

    Dims <= 128 pad to 128 (native tile on all chips).  Wider dims pad to a
    multiple of `mxu_align` (256 fills the 2x256x256 MXU on v6e/v7x; use 128 on
    v5e, whose MXU is 4x128x128).
    """
    if d <= 128:
        return 128
    return _round_up(d, mxu_align)


def _vmem_limit_bytes(bt, in_dim, H, OP, L, out_itemsize):
    """Scoped-VMEM budget: double-buffered operands + activation headroom."""
    db = 2  # BlockSpec pipelining double-buffers every operand
    x_b = db * bt * in_dim * 4                                        # f32 input tile
    o_b = db * bt * OP * out_itemsize                                 # output tile
    w_b = db * 2 * (in_dim * H + max(L - 2, 1) * H * H + H * OP)      # bf16 weights
    b_b = db * 4 * ((L - 1) * H + OP)                                 # f32 biases
    act_b = 6 * bt * max(H, OP) * 4                                   # in-kernel temporaries
    slack = 4 << 20
    return int(min(x_b + o_b + w_b + b_b + act_b + slack, 96 << 20))


def _mlp_kernel(x_ref, w0_ref, wmid_ref, wlast_ref, bhid_ref, blast_ref, o_ref,
                *, num_layers):
    """Fused MLP over one batch tile.

    x_ref:     [bt, in_dim]     f32  (true feature width, cast to bf16 here)
    w0_ref:    [in_dim, H]      bf16 (first layer, cols zero-padded)
    wmid_ref:  [max(L-2,1),H,H] bf16 (hidden layers, zero-padded)
    wlast_ref: [H, OP]          bf16 (last layer, zero-padded)
    bhid_ref:  [L-1, 1, H]      f32  (biases of the ReLU layers)
    blast_ref: [1, OP]          f32
    o_ref:     [bt, OP]              (lane-dense output; caller slices to out_dim)
    """
    h = x_ref[...].astype(jnp.bfloat16)                       # in-kernel bf16 cast

    # First Linear + ReLU (bias-add and ReLU in f32).
    z = jnp.dot(h, w0_ref[...], preferred_element_type=jnp.float32)
    z = jnp.maximum(z + bhid_ref[0], 0.0)
    h = z.astype(jnp.bfloat16)

    # Middle Linear + ReLU layers.
    for l in range(num_layers - 2):
        z = jnp.dot(h, wmid_ref[l], preferred_element_type=jnp.float32)
        z = jnp.maximum(z + bhid_ref[l + 1], 0.0)
        h = z.astype(jnp.bfloat16)

    # Final Linear (no activation).
    z = jnp.dot(h, wlast_ref[...], preferred_element_type=jnp.float32)
    o_ref[...] = (z + blast_ref[...]).astype(o_ref.dtype)


def encoder_forward(x, params, *, batch_tile=512, mxu_align=256,
                    out_dtype=jnp.float32):
    """Runs the fused MLP Pallas kernel.

    x: [B, input_dim] float32
    params: list of (W, b) with W: [in, out] (transpose of PyTorch layout), b: [out].
    """
    B, in_dim = x.shape
    L = len(params)
    assert L >= 2
    out_dim = params[-1][0].shape[1]

    hidden_widths = [w.shape[1] for (w, _) in params[:-1]]
    H = max(_pad_width(d, mxu_align) for d in hidden_widths)   # shared hidden width
    OP = _pad_width(out_dim, mxu_align)                        # output width

    # --- Batch tiling ------------------------------------------------------
    # Tile must be a multiple of 8 (sublanes).  Default 512 rows; keep >= 2
    # grid steps whenever the batch allows it so v7x's two TensorCores both get
    # work from the "parallel" axis.
    B8 = _round_up(B, 8)
    bt = _round_up(min(batch_tile, B8), 8)
    if bt >= B8 and B8 >= 16:
        bt = _round_up((B8 + 1) // 2, 8)
    B_pad = _round_up(B, bt)
    grid = (B_pad // bt,)

    # --- Parameter packing (zero padding keeps numerics exact) -------------
    w0 = params[0][0].astype(jnp.bfloat16)
    w0 = jnp.pad(w0, ((0, 0), (0, H - w0.shape[1])))                    # [in_dim, H]

    mids = params[1:-1]
    if mids:
        wmid = jnp.stack([
            jnp.pad(w.astype(jnp.bfloat16),
                    ((0, H - w.shape[0]), (0, H - w.shape[1])))
            for (w, _) in mids
        ])                                                              # [L-2, H, H]
    else:
        wmid = jnp.zeros((1, H, H), jnp.bfloat16)                       # unused placeholder

    wl = params[-1][0].astype(jnp.bfloat16)
    wlast = jnp.pad(wl, ((0, H - wl.shape[0]), (0, OP - wl.shape[1])))  # [H, OP]

    bhid = jnp.stack([
        jnp.pad(b.reshape(-1).astype(jnp.float32), (0, H - b.size)).reshape(1, H)
        for (_, b) in params[:-1]
    ])                                                                  # [L-1, 1, H]
    blast = jnp.pad(params[-1][1].reshape(-1).astype(jnp.float32),
                    (0, OP - out_dim)).reshape(1, OP)                   # [1, OP]

    # x is fed at its TRUE feature width in f32 (bf16 cast happens in-kernel):
    # no wrapper-side pad/cast HBM round trip.  Batch padding is a no-op when
    # B % bt == 0 (as in the demo below).
    x_p = x if B_pad == B else jnp.pad(x, ((0, B_pad - B), (0, 0)))

    kernel = functools.partial(_mlp_kernel, num_layers=L)

    out = pl.pallas_call(
        kernel,
        out_shape=jax.ShapeDtypeStruct((B_pad, OP), out_dtype),
        grid_spec=pl.GridSpec(
            grid=grid,
            in_specs=[
                pl.BlockSpec((bt, in_dim), lambda i: (i, 0)),   # x: tiled over batch
                # Constant-index blocks: fetched once, never re-DMA'd per step.
                pl.BlockSpec(w0.shape, lambda i: (0, 0)),
                pl.BlockSpec(wmid.shape, lambda i: (0, 0, 0)),
                pl.BlockSpec(wlast.shape, lambda i: (0, 0)),
                pl.BlockSpec(bhid.shape, lambda i: (0, 0, 0)),
                pl.BlockSpec(blast.shape, lambda i: (0, 0)),
            ],
            out_specs=pl.BlockSpec((bt, OP), lambda i: (i, 0)),
        ),
        compiler_params=pltpu.CompilerParams(
            dimension_semantics=("parallel",),
            vmem_limit_bytes=_vmem_limit_bytes(
                bt, in_dim, H, OP, L, jnp.dtype(out_dtype).itemsize),
        ),
    )(x_p, w0, wmid, wlast, bhid, blast)

    # Slice back to the logical shape.  This is one extra small XLA copy;
    # callers that can consume the padded (B_pad, OP) buffer may skip it
    # (note: padded *batch rows* are not zero, only padded feature columns are).
    return out[:B, :out_dim]


def init_encoder_params(key, input_dim, hidden_dim, output_dim, num_layers=4):
    """Deterministic init mimicking nn.Linear's U(-1/sqrt(fan_in), 1/sqrt(fan_in))."""
    dims = [input_dim] + list(hidden_dim[: num_layers - 1]) + [output_dim]
    params = []
    for li in range(num_layers):
        fan_in, fan_out = dims[li], dims[li + 1]
        key, kw, kb = jax.random.split(key, 3)
        bound = 1.0 / (fan_in ** 0.5)
        w = jax.random.uniform(kw, (fan_in, fan_out), jnp.float32, -bound, bound)
        b = jax.random.uniform(kb, (fan_out,), jnp.float32, -bound, bound)
        params.append((w, b))
    return params


def encoder_reference_mixed(x, params):
    """Pure-JAX reference with the same bf16-in / f32-accumulate recipe as the kernel."""
    h = x.astype(jnp.bfloat16)
    for (w, b) in params[:-1]:
        z = jnp.dot(h, w.astype(jnp.bfloat16), preferred_element_type=jnp.float32)
        h = jnp.maximum(z + b.reshape(1, -1), 0.0).astype(jnp.bfloat16)
    w, b = params[-1]
    z = jnp.dot(h, w.astype(jnp.bfloat16), preferred_element_type=jnp.float32)
    return z + b.reshape(1, -1)


def encoder_reference_f32(x, params):
    """Pure-f32 reference of the PyTorch forward pass (loose sanity check)."""
    h = x
    for (w, b) in params[:-1]:
        h = jnp.maximum(h @ w + b.reshape(1, -1), 0.0)
    w, b = params[-1]
    return h @ w + b.reshape(1, -1)


if __name__ == "__main__":
    key = jax.random.PRNGKey(0)

    # Shapes consistent with Encoder(input_dim, hidden_dim, output_dim):
    batch = 1024                # default batch_tile=512 -> grid=(2,), both v7x TCs busy
    input_dim = 32
    hidden_dim = [32, 32, 32]   # num_layers - 1 hidden sizes
    output_dim = 16

    key, kx = jax.random.split(key)
    x = jax.random.normal(kx, (batch, input_dim), jnp.float32)
    params = init_encoder_params(key, input_dim, hidden_dim, output_dim, num_layers=4)

    fwd = jax.jit(encoder_forward)
    out = jax.block_until_ready(fwd(x, params))

    assert out.shape == (batch, output_dim)

    # Tight check against a reference using the identical mixed-precision recipe.
    ref_mixed = encoder_reference_mixed(x, params)
    assert jnp.allclose(out, ref_mixed, atol=1e-3, rtol=1e-3), "mismatch vs mixed-precision reference"

    # Loose semantic sanity check against the pure-f32 PyTorch-equivalent forward.
    # TODO(synk): bf16 MXU operands deviate slightly from PyTorch's all-f32 math;
    # confirmed only to 1e-1 here.
    ref_f32 = encoder_reference_f32(x, params)
    assert jnp.allclose(out, ref_f32, atol=1e-1, rtol=1e-1), "mismatch vs f32 reference"

    print("KERNEL_OK")
</pallas_src>

<mosaic_0001>
module attributes {stable_mosaic.version = 11 : i64} {
  func.func @_mlp_kernel(%arg0: i32, %arg1: memref<512x32xf32, #tpu.memory_space<vmem>>, %arg2: memref<32x128xbf16, #tpu.memory_space<vmem>>, %arg3: memref<2x128x128xbf16, #tpu.memory_space<vmem>>, %arg4: memref<128x128xbf16, #tpu.memory_space<vmem>>, %arg5: memref<3x1x128xf32, #tpu.memory_space<vmem>>, %arg6: memref<1x128xf32, #tpu.memory_space<vmem>>, %arg7: memref<512x128xf32, #tpu.memory_space<vmem>>) attributes {dimension_semantics = [#tpu.dimension_semantics<parallel>], iteration_bounds = array<i64: 2>, scalar_prefetch = 0 : i64, scratch_operands = 0 : i64, tpu.core_type = #tpu.core_type<tc>, window_params = [{transform_indices = @transform_0, window_bounds = array<i64: 512, 32>}, {pipeline_mode = #tpu.pipeline_mode<synchronous>, transform_indices = @transform_1, window_bounds = array<i64: 32, 128>}, {pipeline_mode = #tpu.pipeline_mode<synchronous>, transform_indices = @transform_2, window_bounds = array<i64: 2, 128, 128>}, {pipeline_mode = #tpu.pipeline_mode<synchronous>, transform_indices = @transform_3, window_bounds = array<i64: 128, 128>}, {pipeline_mode = #tpu.pipeline_mode<synchronous>, transform_indices = @transform_4, window_bounds = array<i64: 3, 1, 128>}, {pipeline_mode = #tpu.pipeline_mode<synchronous>, transform_indices = @transform_5, window_bounds = array<i64: 1, 128>}, {transform_indices = @transform_6, window_bounds = array<i64: 512, 128>}]} {
    %c0 = arith.constant 0 : index
    %c0_0 = arith.constant 0 : index
    %0 = vector.load %arg1[%c0, %c0_0] : memref<512x32xf32, #tpu.memory_space<vmem>>, vector<512x32xf32>
    %1 = arith.truncf %0 : vector<512x32xf32> to vector<512x32xbf16>
    %c0_1 = arith.constant 0 : index
    %c0_2 = arith.constant 0 : index
    %2 = vector.load %arg2[%c0_1, %c0_2] : memref<32x128xbf16, #tpu.memory_space<vmem>>, vector<32x128xbf16>
    %cst = arith.constant dense<0.000000e+00> : vector<512x128xf32>
    %3 = tpu.matmul %1, %2, %cst {dimension_numbers = #tpu.dot_dimension_numbers<[1], [0], [0], [1], [0, 0, 1, 1], [], []>} : vector<512x32xbf16>, vector<32x128xbf16>, vector<512x128xf32> -> vector<512x128xf32>
    %c0_3 = arith.constant 0 : index
    %c0_4 = arith.constant 0 : index
    %c0_5 = arith.constant 0 : index
    %4 = vector.load %arg5[%c0_3, %c0_4, %c0_5] : memref<3x1x128xf32, #tpu.memory_space<vmem>>, vector<1x1x128xf32>
    %5 = vector.shape_cast %4 : vector<1x1x128xf32> to vector<1x128xf32>
    %6 = vector.broadcast %5 : vector<1x128xf32> to vector<512x128xf32>
    %7 = arith.addf %3, %6 : vector<512x128xf32>
    %cst_6 = arith.constant 0.000000e+00 : f32
    %8 = vector.broadcast %cst_6 : f32 to vector<512x128xf32>
    %9 = arith.maximumf %7, %8 : vector<512x128xf32>
    %10 = arith.truncf %9 : vector<512x128xf32> to vector<512x128xbf16>
    %c0_7 = arith.constant 0 : index
    %c0_8 = arith.constant 0 : index
    %c0_9 = arith.constant 0 : index
    %11 = vector.load %arg3[%c0_7, %c0_8, %c0_9] : memref<2x128x128xbf16, #tpu.memory_space<vmem>>, vector<1x128x128xbf16>
    %12 = vector.shape_cast %11 : vector<1x128x128xbf16> to vector<128x128xbf16>
    %cst_10 = arith.constant dense<0.000000e+00> : vector<512x128xf32>
    %13 = tpu.matmul %10, %12, %cst_10 {dimension_numbers = #tpu.dot_dimension_numbers<[1], [0], [0], [1], [0, 0, 1, 1], [], []>} : vector<512x128xbf16>, vector<128x128xbf16>, vector<512x128xf32> -> vector<512x128xf32>
    %c1 = arith.constant 1 : index
    %c0_11 = arith.constant 0 : index
    %c0_12 = arith.constant 0 : index
    %14 = vector.load %arg5[%c1, %c0_11, %c0_12] : memref<3x1x128xf32, #tpu.memory_space<vmem>>, vector<1x1x128xf32>
    %15 = vector.shape_cast %14 : vector<1x1x128xf32> to vector<1x128xf32>
    %16 = vector.broadcast %15 : vector<1x128xf32> to vector<512x128xf32>
    %17 = arith.addf %13, %16 : vector<512x128xf32>
    %cst_13 = arith.constant 0.000000e+00 : f32
    %18 = vector.broadcast %cst_13 : f32 to vector<512x128xf32>
    %19 = arith.maximumf %17, %18 : vector<512x128xf32>
    %20 = arith.truncf %19 : vector<512x128xf32> to vector<512x128xbf16>
    %c1_14 = arith.constant 1 : index
    %c0_15 = arith.constant 0 : index
    %c0_16 = arith.constant 0 : index
    %21 = vector.load %arg3[%c1_14, %c0_15, %c0_16] : memref<2x128x128xbf16, #tpu.memory_space<vmem>>, vector<1x128x128xbf16>
    %22 = vector.shape_cast %21 : vector<1x128x128xbf16> to vector<128x128xbf16>
    %cst_17 = arith.constant dense<0.000000e+00> : vector<512x128xf32>
    %23 = tpu.matmul %20, %22, %cst_17 {dimension_numbers = #tpu.dot_dimension_numbers<[1], [0], [0], [1], [0, 0, 1, 1], [], []>} : vector<512x128xbf16>, vector<128x128xbf16>, vector<512x128xf32> -> vector<512x128xf32>
    %c2 = arith.constant 2 : index
    %c0_18 = arith.constant 0 : index
    %c0_19 = arith.constant 0 : index
    %24 = vector.load %arg5[%c2, %c0_18, %c0_19] : memref<3x1x128xf32, #tpu.memory_space<vmem>>, vector<1x1x128xf32>
    %25 = vector.shape_cast %24 : vector<1x1x128xf32> to vector<1x128xf32>
    %26 = vector.broadcast %25 : vector<1x128xf32> to vector<512x128xf32>
    %27 = arith.addf %23, %26 : vector<512x128xf32>
    %cst_20 = arith.constant 0.000000e+00 : f32
    %28 = vector.broadcast %cst_20 : f32 to vector<512x128xf32>
    %29 = arith.maximumf %27, %28 : vector<512x128xf32>
    %30 = arith.truncf %29 : vector<512x128xf32> to vector<512x128xbf16>
    %c0_21 = arith.constant 0 : index
    %c0_22 = arith.constant 0 : index
    %31 = vector.load %arg4[%c0_21, %c0_22] : memref<128x128xbf16, #tpu.memory_space<vmem>>, vector<128x128xbf16>
    %cst_23 = arith.constant dense<0.000000e+00> : vector<512x128xf32>
    %32 = tpu.matmul %30, %31, %cst_23 {dimension_numbers = #tpu.dot_dimension_numbers<[1], [0], [0], [1], [0, 0, 1, 1], [], []>} : vector<512x128xbf16>, vector<128x128xbf16>, vector<512x128xf32> -> vector<512x128xf32>
    %c0_24 = arith.constant 0 : index
    %c0_25 = arith.constant 0 : index
    %33 = vector.load %arg6[%c0_24, %c0_25] : memref<1x128xf32, #tpu.memory_space<vmem>>, vector<1x128xf32>
    %34 = vector.broadcast %33 : vector<1x128xf32> to vector<512x128xf32>
    %35 = arith.addf %32, %34 : vector<512x128xf32>
    %c0_26 = arith.constant 0 : index
    %c0_27 = arith.constant 0 : index
    %36 = vector.load %arg7[%c0_26, %c0_27] : memref<512x128xf32, #tpu.memory_space<vmem>>, vector<512x128xf32>
    tpu.vector_store %arg7[%c0_26, %c0_27], %35 {strides = array<i32>} : memref<512x128xf32, #tpu.memory_space<vmem>>, vector<512x128xf32>,
    return
  }
  func.func @transform_0(%arg0: i32) -> (i32, i32) {
    %c0_i32 = arith.constant 0 : i32
    %c0_i32_0 = arith.constant 0 : i32
    return %arg0, %c0_i32 : i32, i32
  }
  func.func @transform_1(%arg0: i32) -> (i32, i32) {
    %c0_i32 = arith.constant 0 : i32
    %c0_i32_0 = arith.constant 0 : i32
    %c0_i32_1 = arith.constant 0 : i32
    return %c0_i32, %c0_i32_0 : i32, i32
  }
  func.func @transform_2(%arg0: i32) -> (i32, i32, i32) {
    %c0_i32 = arith.constant 0 : i32
    %c0_i32_0 = arith.constant 0 : i32
    %c0_i32_1 = arith.constant 0 : i32
    %c0_i32_2 = arith.constant 0 : i32
    return %c0_i32, %c0_i32_0, %c0_i32_1 : i32, i32, i32
  }
  func.func @transform_3(%arg0: i32) -> (i32, i32) {
    %c0_i32 = arith.constant 0 : i32
    %c0_i32_0 = arith.constant 0 : i32
    %c0_i32_1 = arith.constant 0 : i32
    return %c0_i32, %c0_i32_0 : i32, i32
  }
  func.func @transform_4(%arg0: i32) -> (i32, i32, i32) {
    %c0_i32 = arith.constant 0 : i32
    %c0_i32_0 = arith.constant 0 : i32
    %c0_i32_1 = arith.constant 0 : i32
    %c0_i32_2 = arith.constant 0 : i32
    return %c0_i32, %c0_i32_0, %c0_i32_1 : i32, i32, i32
  }
  func.func @transform_5(%arg0: i32) -> (i32, i32) {
    %c0_i32 = arith.constant 0 : i32
    %c0_i32_0 = arith.constant 0 : i32
    %c0_i32_1 = arith.constant 0 : i32
    return %c0_i32, %c0_i32_0 : i32, i32
  }
  func.func @transform_6(%arg0: i32) -> (i32, i32) {
    %c0_i32 = arith.constant 0 : i32
    %c0_i32_0 = arith.constant 0 : i32
    return %arg0, %c0_i32 : i32, i32
  }
}

</mosaic_0001>

<bundles_post_ra>
// kernel: encoder_forward.1
= control target key start
LH: loop header
LB: loop body
LE: loop exit
PB: predicated region body
PF: predicated region fallthrough
CT: control target
= control target key end

     0   :  { %s2898_s21 = smov 0   ;;  %s3440_s0 = inlined_call_operand.vmem [shape: f32[1024,32], index: 0, kind: input, shape index: {}]   ;;  %s3441_s1 = inlined_call_operand.vmem [shape: bf16[32,128], index: 1, kind: input, shape index: {}]   ;;  %s3442_s2 = inlined_call_operand.vmem [shape: bf16[2,128,128], index: 2, kind: input, shape index: {}]   ;;  %s3443_s3 = inlined_call_operand.vmem [shape: bf16[128,128], index: 3, kind: input, shape index: {}]   ;;  %s3444_s4 = inlined_call_operand.vmem [shape: f32[3,1,128], index: 4, kind: input, shape index: {}]   ;;  %s3445_s5 = inlined_call_operand.vmem [shape: f32[1,128], index: 5, kind: input, shape index: {}]   ;;  %s3446_s6 = inlined_call_operand.vmem [shape: f32[1024,128], index: 6, kind: output, shape index: {}]  }
   0x1 LB: > { %s2252_s22 = sadd.s32 4294967295, %s2861_s21   ;;  %p2256_p0 = scmp.ge.s32.totalorder %s2861_s21, 1  ;;  %s2861_s21 = sphi %s2898_s21, %s16_s21  }
   0x2   : > { %p213_p1 = scmp.lt.s32.totalorder %s2861_s21, 3 }
   0x4   : > { %p214_p2 = pnand %p2256_p0, %p213_p1 }
   0x5   : > { %s2257_s25 = sshll.u32 (!%p214_p2), %s2252_s22, 6 }
   0x6   : > { %217 = sbr.rel (%p214_p2) target bundleno = 960 (0x3c0), region = 44  ;;  %p244_p3 = scmp.lt.s32.totalorder (!%p214_p2), %s2257_s25, 127 }
   0xb   : > { %v2829_v0 = vld [vmem:[%s3441_s1 + $0x8] sm:$0xff]   ;;  %v2830_v1 = vld [vmem:[%s3441_s1] sm:$0xff]   ;;  %s3448_s25 = smov (!%p244_p3, %s2257_s25), 127  ;;  %v2831_v2 = vld [vmem:[%s3442_s2 + $0x38] sm:$0xff]   ;;  %vm375_vm0 = vcmask 261120  }
   0xc   : > { %2497 = vmatprep.subr.bf16.mxu0 %v2829_v0  ;;  %v2832_v3 = vld [vmem:[%s3442_s2 + $0x30] sm:$0xff]   ;;  %s2258_s8 = sshll.u32 %s3448_s25, 3  ;;  %2565 = vmatprep.subr.bf16.mxu1 %v2831_v2  ;;  %v2833_v4 = vld [vmem:[%s3442_s2 + $0x28] sm:$0xff]   ;;  %v2834_v14 = vld [vmem:[%s3442_s2 + $0x20] sm:$0xff]  }
   0xd   : > { %2498 = vmatpush3.bf16.msra.mxu0 %v2829_v0  ;;  %s2926_s11 = scalar_lea.vmem %s3440_s0, %s2258_s8  ;;  %2566 = vmatpush3.bf16.msra.mxu1 %v2831_v2  ;;  %v2835_v31 = vld [vmem:[%s3442_s2 + $0x18] sm:$0xff]   ;;  %v2836_v0 = vld [vmem:[%s3442_s2 + $0x10] sm:$0xff]   ;;  %s3307_s26 = scalar_lea.vmem %s3446_s6, %s2258_s8 }
   0xe   : > { %2499 = vmatprep.subr.bf16.mxu0 %v2830_v1  ;;  %v256_v5 = vld [vmem:[%s2926_s11] sm:$0xff]  ;;  %v257_v6 = vld [vmem:[%s2926_s11 + $0x8] sm:$0xff]  ;;  %v258_v7 = vld [vmem:[%s2926_s11 + $0x10] sm:$0xff]  ;;  %2567 = vmatprep.subr.bf16.mxu1 %v2832_v3 }
   0xf   : > { %v320_v8 = vpack.c.bf16 %v257_v6, %v256_v5  ;;  %v259_v9 = vld [vmem:[%s2926_s11 + $0x18] sm:$0xff]  ;;  %v260_v10 = vld [vmem:[%s2926_s11 + $0x20] sm:$0xff]  ;;  %v261_v11 = vld [vmem:[%s2926_s11 + $0x28] sm:$0xff] }
  0x10   : > { %v321_v12 = vpack.c.bf16 %v259_v9, %v258_v7  ;;  %v322_v13 = vpack.c.bf16 %v261_v11, %v260_v10  ;;  %v262_v15 = vld [vmem:[%s2926_s11 + $0x30] sm:$0xff]  ;;  %v263_v16 = vld [vmem:[%s2926_s11 + $0x38] sm:$0xff]  ;;  %v264_v17 = vld [vmem:[%s2926_s11 + $0x40] sm:$0xff] }
  0x11   : > { %2500 = vmatpush3.bf16.msra.mxu0 %v2830_v1  ;;  %2501 = vmatprep.mubr.msk.bf16.mxu0 %vm375_vm0, %v320_v8  ;;  %v265_v18 = vld [vmem:[%s2926_s11 + $0x48] sm:$0xff]  ;;  %v323_v19 = vpack.c.bf16 %v263_v16, %v262_v15  ;;  %v266_v21 = vld [vmem:[%s2926_s11 + $0x50] sm:$0xff]  ;;  %v267_v22 = vld [vmem:[%s2926_s11 + $0x58] sm:$0xff] }
  0x12   : > { %2568 = vmatpush3.bf16.msra.mxu1 %v2832_v3  ;;  %v324_v20 = vpack.c.bf16 %v265_v18, %v264_v17  ;;  %v268_v23 = vld [vmem:[%s2926_s11 + $0x60] sm:$0xff]  ;;  %v269_v24 = vld [vmem:[%s2926_s11 + $0x68] sm:$0xff]  ;;  %v325_v25 = vpack.c.bf16 %v267_v22, %v266_v21  ;;  %v270_v27 = vld [vmem:[%s2926_s11 + $0x70] sm:$0xff] }
  0x13   : > { %2569 = vmatprep.subr.bf16.mxu1 %v2833_v4  ;;  %v326_v26 = vpack.c.bf16 %v269_v24, %v268_v23  ;;  %v271_v28 = vld [vmem:[%s2926_s11 + $0x78] sm:$0xff]  ;;  %v272_v29 = vld [vmem:[%s2926_s11 + $0x80] sm:$0xff]  ;;  %v273_v30 = vld [vmem:[%s2926_s11 + $0x88] sm:$0xff] }
  0x14   : > { %2502 = vmatmul.mubr.msk.bf16.vlgmr.msra.gmra.mxu0 %vm375_vm0, %v321_v12  ;;  %v327_v32 = vpack.c.bf16 %v271_v28, %v270_v27  ;;  %v328_v33 = vpack.c.bf16 %v273_v30, %v272_v29  ;;  %v274_v34 = vld [vmem:[%s2926_s11 + $0x90] sm:$0xff]  ;;  %v275_v35 = vld [vmem:[%s2926_s11 + $0x98] sm:$0xff]  ;;  %v276_v36 = vld [vmem:[%s2926_s11 + $0xa0] sm:$0xff] }
  0x15   : > { %2505 = vmatprep.mubr.msk.bf16.mxu0 %vm375_vm0, %v322_v13  ;;  %v277_v37 = vld [vmem:[%s2926_s11 + $0xa8] sm:$0xff]  ;;  %v329_v38 = vpack.c.bf16 %v275_v35, %v274_v34  ;;  %v278_v40 = vld [vmem:[%s2926_s11 + $0xb0] sm:$0xff]  ;;  %v279_v41 = vld [vmem:[%s2926_s11 + $0xb8] sm:$0xff] }
  0x16   : > { %2570 = vmatpush3.bf16.msra.mxu1 %v2833_v4  ;;  %v330_v39 = vpack.c.bf16 %v277_v37, %v276_v36  ;;  %v280_v42 = vld [vmem:[%s2926_s11 + $0xc0] sm:$0xff]  ;;  %v281_v43 = vld [vmem:[%s2926_s11 + $0xc8] sm:$0xff]  ;;  %v331_v44 = vpack.c.bf16 %v279_v41, %v278_v40  ;;  %v282_v46 = vld [vmem:[%s2926_s11 + $0xd0] sm:$0xff] }
  0x17   : > { %2571 = vmatprep.subr.bf16.mxu1 %v2834_v14  ;;  %v332_v45 = vpack.c.bf16 %v281_v43, %v280_v42  ;;  %v283_v47 = vld [vmem:[%s2926_s11 + $0xd8] sm:$0xff]  ;;  %v284_v48 = vld [vmem:[%s2926_s11 + $0xe0] sm:$0xff]  ;;  %v285_v49 = vld [vmem:[%s2926_s11 + $0xe8] sm:$0xff] }
  0x18   : > { %v333_v50 = vpack.c.bf16 %v283_v47, %v282_v46  ;;  %v334_v51 = vpack.c.bf16 %v285_v49, %v284_v48  ;;  %v286_v52 = vld [vmem:[%s2926_s11 + $0xf0] sm:$0xff]  ;;  %v287_v53 = vld [vmem:[%s2926_s11 + $0xf8] sm:$0xff]  ;;  %v288_v54 = vld [vmem:[%s2926_s11 + $0x100] sm:$0xff] }
  0x19   : > { %v289_v55 = vld [vmem:[%s2926_s11 + $0x108] sm:$0xff]  ;;  %v335_v56 = vpack.c.bf16 %v287_v53, %v286_v52  ;;  %v290_v58 = vld [vmem:[%s2926_s11 + $0x110] sm:$0xff]  ;;  %v291_v59 = vld [vmem:[%s2926_s11 + $0x118] sm:$0xff] }
  0x1a   : > { %2572 = vmatpush3.bf16.msra.mxu1 %v2834_v14  ;;  %v336_v57 = vpack.c.bf16 %v289_v55, %v288_v54  ;;  %v292_v60 = vld [vmem:[%s2926_s11 + $0x120] sm:$0xff]  ;;  %v293_v61 = vld [vmem:[%s2926_s11 + $0x128] sm:$0xff]  ;;  %v337_v62 = vpack.c.bf16 %v291_v59, %v290_v58  ;;  %v294_v1 = vld [vmem:[%s2926_s11 + $0x130] sm:$0xff] }
  0x1b   : > { %2573 = vmatprep.subr.bf16.mxu1 %v2835_v31  ;;  %v338_v63 = vpack.c.bf16 %v293_v61, %v292_v60  ;;  %v295_v2 = vld [vmem:[%s2926_s11 + $0x138] sm:$0xff]  ;;  %v296_v3 = vld [vmem:[%s2926_s11 + $0x140] sm:$0xff]  ;;  %v297_v4 = vld [vmem:[%s2926_s11 + $0x148] sm:$0xff] }
  0x1c   : > { %2506 = vmatmul.mubr.msk.bf16.gmra.mxu0 %vm375_vm0, %v323_v19  ;;  %v339_v5 = vpack.c.bf16 %v295_v2, %v294_v1  ;;  %v2837_v6 = vld [vmem:[%s3442_s2 + $0x8] sm:$0xff]   ;;  %v340_v7 = vpack.c.bf16 %v297_v4, %v296_v3  ;;  %v2838_v8 = vld [vmem:[%s3442_s2] sm:$0xff]   ;;  %v298_v9 = vld [vmem:[%s2926_s11 + $0x150] sm:$0xff] }
  0x1d   : > { %2509 = vmatprep.mubr.msk.bf16.mxu0 %vm375_vm0, %v324_v20  ;;  %v299_v10 = vld [vmem:[%s2926_s11 + $0x158] sm:$0xff]  ;;  %v300_v11 = vld [vmem:[%s2926_s11 + $0x160] sm:$0xff]  ;;  %v301_v12 = vld [vmem:[%s2926_s11 + $0x168] sm:$0xff] }
  0x1e   : > { %2574 = vmatpush3.bf16.msra.mxu1 %v2835_v31  ;;  %v341_v13 = vpack.c.bf16 %v299_v10, %v298_v9  ;;  %v342_v14 = vpack.c.bf16 %v301_v12, %v300_v11  ;;  %v302_v15 = vld [vmem:[%s2926_s11 + $0x170] sm:$0xff]  ;;  %v303_v16 = vld [vmem:[%s2926_s11 + $0x178] sm:$0xff]  ;;  %v304_v17 = vld [vmem:[%s2926_s11 + $0x180] sm:$0xff] }
  0x1f   : > { %2575 = vmatprep.subr.bf16.mxu1 %v2836_v0  ;;  %v305_v18 = vld [vmem:[%s2926_s11 + $0x188] sm:$0xff]  ;;  %v343_v19 = vpack.c.bf16 %v303_v16, %v302_v15  ;;  %v306_v21 = vld [vmem:[%s2926_s11 + $0x190] sm:$0xff]  ;;  %v307_v22 = vld [vmem:[%s2926_s11 + $0x198] sm:$0xff] }
  0x20   : > { %v344_v20 = vpack.c.bf16 %v305_v18, %v304_v17  ;;  %v308_v23 = vld [vmem:[%s2926_s11 + $0x1a0] sm:$0xff]  ;;  %v309_v24 = vld [vmem:[%s2926_s11 + $0x1a8] sm:$0xff]  ;;  %v310_v27 = vld [vmem:[%s2926_s11 + $0x1b0] sm:$0xff] }
  0x21   : > { %v311_v28 = vld [vmem:[%s2926_s11 + $0x1b8] sm:$0xff]  ;;  %v312_v29 = vld [vmem:[%s2926_s11 + $0x1c0] sm:$0xff]  ;;  %v313_v30 = vld [vmem:[%s2926_s11 + $0x1c8] sm:$0xff] }
  0x22   : > { %2576 = vmatpush3.bf16.msra.mxu1 %v2836_v0  ;;  %v347_v31 = vpack.c.bf16 %v311_v28, %v310_v27  ;;  %v315_v34 = vld [vmem:[%s2926_s11 + $0x1d8] sm:$0xff]  ;;  %v316_v35 = vld [vmem:[%s2926_s11 + $0x1e0] sm:$0xff]  ;;  %v317_v36 = vld [vmem:[%s2926_s11 + $0x1e8] sm:$0xff] }
  0x23   : > { %2577 = vmatprep.subr.bf16.mxu1 %v2837_v6  ;;  %v319_v40 = vld [vmem:[%s2926_s11 + $0x1f8] sm:$0xff]  ;;  %v2840_v43 = vld [vmem:[%s3442_s2 + $0x70] sm:$0xff]   ;;  %v3054_v47 = vld [vmem:[%s3444_s4] ss:$0 sm:$0xff] }
  0x24   : > { %2510 = vmatmul.mubr.msk.bf16.gmra.mxu0 %vm375_vm0, %v325_v25  ;;  %v345_v25 = vpack.c.bf16 %v307_v22, %v306_v21  ;;  %v2839_v42 = vld [vmem:[%s3442_s2 + $0x78] sm:$0xff]   ;;  %v2842_v53 = vld [vmem:[%s3442_s2 + $0x60] sm:$0xff]  }
  0x25   : > { %2513 = vmatprep.mubr.msk.bf16.mxu0 %vm375_vm0, %v326_v26  ;;  %v346_v26 = vpack.c.bf16 %v309_v24, %v308_v23  ;;  %2645 = vmatprep.subr.bf16.mxu0 %v2839_v42  ;;  %v2843_v54 = vld [vmem:[%s3442_s2 + $0x58] sm:$0xff]  }
  0x26   : > { %2578 = vmatpush3.bf16.msra.mxu1 %v2837_v6  ;;  %2646 = vmatpush3.bf16.msra.mxu0 %v2839_v42  ;;  %v2845_v6 = vld [vmem:[%s3442_s2 + $0x48] sm:$0xff]  }
  0x27   : > { %2579 = vmatprep.subr.bf16.mxu1 %v2838_v8  ;;  %2647 = vmatprep.subr.bf16.mxu0 %v2840_v43 }
  0x2a   : > { %2580 = vmatpush3.bf16.msra.mxu1 %v2838_v8  ;;  %2648 = vmatpush3.bf16.msra.mxu0 %v2840_v43 }
  0x2c   : > { %2514 = vmatmul.mubr.msk.bf16.gmra.mxu0 %vm375_vm0, %v327_v32  ;;  %v348_v32 = vpack.c.bf16 %v313_v30, %v312_v29 }
  0x2d   : > { %2517 = vmatprep.mubr.msk.bf16.mxu0 %vm375_vm0, %v328_v33  ;;  %v314_v33 = vld [vmem:[%s2926_s11 + $0x1d0] sm:$0xff] }
  0x2e   : > { %v349_v37 = vpack.c.bf16 %v315_v34, %v314_v33 }
  0x34   : > { %2518 = vmatmul.mubr.msk.bf16.gmra.mxu0 %vm375_vm0, %v329_v38  ;;  %v350_v38 = vpack.c.bf16 %v317_v36, %v316_v35 }
  0x35   : > { %2521 = vmatprep.mubr.msk.bf16.mxu0 %vm375_vm0, %v330_v39  ;;  %v318_v39 = vld [vmem:[%s2926_s11 + $0x1f0] sm:$0xff] }
  0x36   : > { %v351_v41 = vpack.c.bf16 %v319_v40, %v318_v39 }
  0x3c   : > { %2522 = vmatmul.mubr.msk.bf16.gmra.mxu0 %vm375_vm0, %v331_v44  ;;  %v2841_v44 = vld [vmem:[%s3442_s2 + $0x68] sm:$0xff]  }
  0x3d   : > { %2525 = vmatprep.mubr.msk.bf16.mxu0 %vm375_vm0, %v332_v45  ;;  %2649 = vmatprep.subr.bf16.mxu0 %v2841_v44 }
  0x3e   : > { %2650 = vmatpush3.bf16.msra.mxu0 %v2841_v44 }
  0x3f   : > { %2651 = vmatprep.subr.bf16.mxu0 %v2842_v53 }
  0x42   : > { %2652 = vmatpush3.bf16.msra.mxu0 %v2842_v53 }
  0x43   : > { %2653 = vmatprep.subr.bf16.mxu0 %v2843_v54 }
  0x44   : > { %2526 = vmatmul.mubr.msk.bf16.gmra.mxu0 %vm375_vm0, %v333_v50 }
  0x45   : > { %2529 = vmatprep.mubr.msk.bf16.mxu0 %vm375_vm0, %v334_v51 }
  0x46   : > { %2654 = vmatpush3.bf16.msra.mxu0 %v2843_v54 }
  0x4c   : > { %2530 = vmatmul.mubr.msk.bf16.gmra.mxu0 %vm375_vm0, %v335_v56 }
  0x4d   : > { %2533 = vmatprep.mubr.msk.bf16.mxu0 %vm375_vm0, %v336_v57 }
  0x54   : > { %2534 = vmatmul.mubr.msk.bf16.gmra.mxu0 %vm375_vm0, %v337_v62  ;;  %v2844_v62 = vld [vmem:[%s3442_s2 + $0x50] sm:$0xff]  }
  0x55   : > { %2537 = vmatprep.mubr.msk.bf16.mxu0 %vm375_vm0, %v338_v63  ;;  %2655 = vmatprep.subr.bf16.mxu0 %v2844_v62 }
  0x56   : > { %2656 = vmatpush3.bf16.msra.mxu0 %v2844_v62 }
  0x57   : > { %2657 = vmatprep.subr.bf16.mxu0 %v2845_v6 }
  0x5a   : > { %2658 = vmatpush3.bf16.msra.mxu0 %v2845_v6 }
  0x5c   : > { %2538 = vmatmul.mubr.msk.bf16.gmra.mxu0 %vm375_vm0, %v339_v5 }
  0x5d   : > { %2541 = vmatprep.mubr.msk.bf16.mxu0 %vm375_vm0, %v340_v7 }
  0x64   : > { %2542 = vmatmul.mubr.msk.bf16.gmra.mxu0 %vm375_vm0, %v341_v13 }
  0x65   : > { %2545 = vmatprep.mubr.msk.bf16.mxu0 %vm375_vm0, %v342_v14  ;;  %v2846_v14 = vld [vmem:[%s3442_s2 + $0x40] sm:$0xff]  }
  0x66   : > { %2659 = vmatprep.subr.bf16.mxu0 %v2846_v14 }
  0x67   : > { %2660 = vmatpush3.bf16.msra.mxu0 %v2846_v14 }
  0x6c   : > { %2546 = vmatmul.mubr.msk.bf16.gmra.mxu0 %vm375_vm0, %v343_v19 }
  0x6d   : > { %2549 = vmatprep.mubr.msk.bf16.mxu0 %vm375_vm0, %v344_v20 }
  0x74   : > { %2550 = vmatmul.mubr.msk.bf16.gmra.mxu0 %vm375_vm0, %v345_v25 }
  0x75   : > { %2553 = vmatprep.mubr.msk.bf16.mxu0 %vm375_vm0, %v346_v26 }
  0x7c   : > { %2554 = vmatmul.mubr.msk.bf16.gmra.mxu0 %vm375_vm0, %v347_v31 }
  0x7d   : > { %2557 = vmatprep.mubr.msk.bf16.mxu0 %vm375_vm0, %v348_v32 }
  0x84   : > { %2558 = vmatmul.mubr.msk.bf16.gmra.mxu0 %vm375_vm0, %v349_v37 }
  0x85   : > { %2561 = vmatprep.mubr.msk.bf16.mxu0 %vm375_vm0, %v350_v38 }
  0x8c   : > { %2562 = vmatmul.mubr.msk.bf16.gmra.mxu0 %vm375_vm0, %v351_v41 }
  0xd4   : > { %v2503_v45 = vpop.f32.mrf.mxu0 }
  0xd5   : > { %v515_v51 = vadd.f32 %v2503_v45, %v3054_v47 }
  0xd6   : > { %v506_v46 = vpop.f32.mrf.mxu0 }
  0xd7   : > { %v507_v49 = vadd.f32 %v3054_v47, %v506_v46  ;;  %v763_v60 = vmax.f32 %v515_v51, 0.0 }
  0xd8   : > { %v2504_v48 = vpop.f32.mrf.mxu0 }
  0xd9   : > { %v518_v50 = vadd.f32 %v2504_v48, %v3054_v47  ;;  %v761_v58 = vmax.f32 %v507_v49, 0.0 }
  0xda   : > { %v509_v52 = vpop.f32.mrf.mxu0 }
  0xdb   : > { %v510_v55 = vadd.f32 %v3054_v47, %v509_v52  ;;  %v764_v56 = vmax.f32 %v518_v50, 0.0 }
  0xdc   : > { %v2507_v57 = vpop.f32.mrf.mxu0 }
  0xdd   : > { %v762_v59 = vmax.f32 %v510_v55, 0.0  ;;  %v826_v0 = vpack.c.bf16 %v764_v56, %v763_v60  ;;  %v531_v4 = vadd.f32 %v2507_v57, %v3054_v47 }
  0xde   : > { %v522_v61 = vpop.f32.mrf.mxu0 }
  0xdf   : > { %v825_v63 = vpack.c.bf16 %v762_v59, %v761_v58  ;;  %v523_v2 = vadd.f32 %v3054_v47, %v522_v61  ;;  %v767_v12 = vmax.f32 %v531_v4, 0.0 }
  0xe0   : > { %v2508_v1 = vpop.f32.mrf.mxu0 }
  0xe1   : > { %v534_v3 = vadd.f32 %v2508_v1, %v3054_v47  ;;  %2581 = vmatprep.mubr.bf16.mxu1 %v825_v63  ;;  %v765_v10 = vmax.f32 %v523_v2, 0.0 }
  0xe2   : > { %v525_v5 = vpop.f32.mrf.mxu0  ;;  %2582 = vmatmul.mubr.bf16.vlgmr.msra.gmra.mxu1 %v826_v0 }
  0xe3   : > { %v526_v7 = vadd.f32 %v3054_v47, %v525_v5  ;;  %v768_v8 = vmax.f32 %v534_v3, 0.0 }
  0xe4   : > { %v2511_v9 = vpop.f32.mrf.mxu0 }
  0xe5   : > { %v766_v11 = vmax.f32 %v526_v7, 0.0  ;;  %v828_v16 = vpack.c.bf16 %v768_v8, %v767_v12  ;;  %v547_v20 = vadd.f32 %v2511_v9, %v3054_v47 }
  0xe6   : > { %v538_v13 = vpop.f32.mrf.mxu0 }
  0xe7   : > { %v827_v15 = vpack.c.bf16 %v766_v11, %v765_v10  ;;  %v539_v18 = vadd.f32 %v3054_v47, %v538_v13  ;;  %v771_v27 = vmax.f32 %v547_v20, 0.0 }
  0xe8   : > { %v2512_v17 = vpop.f32.mrf.mxu0 }
  0xe9   : > { %v550_v19 = vadd.f32 %v2512_v17, %v3054_v47  ;;  %2585 = vmatprep.mubr.bf16.mxu1 %v827_v15  ;;  %v769_v25 = vmax.f32 %v539_v18, 0.0 }
  0xea   : > { %v541_v21 = vpop.f32.mrf.mxu0  ;;  %2586 = vmatmul.mubr.bf16.gmra.mxu1 %v828_v16 }
  0xeb   : > { %v542_v22 = vadd.f32 %v3054_v47, %v541_v21  ;;  %v772_v23 = vmax.f32 %v550_v19, 0.0 }
  0xec   : > { %v2515_v24 = vpop.f32.mrf.mxu0 }
  0xed   : > { %v770_v26 = vmax.f32 %v542_v22, 0.0  ;;  %v830_v30 = vpack.c.bf16 %v772_v23, %v771_v27  ;;  %v563_v34 = vadd.f32 %v2515_v24, %v3054_v47 }
  0xee   : > { %v554_v28 = vpop.f32.mrf.mxu0 }
  0xef   : > { %v829_v29 = vpack.c.bf16 %v770_v26, %v769_v25  ;;  %v555_v32 = vadd.f32 %v3054_v47, %v554_v28  ;;  %v775_v41 = vmax.f32 %v563_v34, 0.0 }
  0xf0   : > { %v2516_v31 = vpop.f32.mrf.mxu0 }
  0xf1   : > { %v566_v33 = vadd.f32 %v2516_v31, %v3054_v47  ;;  %2589 = vmatprep.mubr.bf16.mxu1 %v829_v29  ;;  %v773_v39 = vmax.f32 %v555_v32, 0.0 }
  0xf2   : > { %v557_v35 = vpop.f32.mrf.mxu0  ;;  %2590 = vmatmul.mubr.bf16.gmra.mxu1 %v830_v30 }
  0xf3   : > { %v558_v36 = vadd.f32 %v3054_v47, %v557_v35  ;;  %v776_v37 = vmax.f32 %v566_v33, 0.0 }
  0xf4   : > { %v2519_v38 = vpop.f32.mrf.mxu0 }
  0xf5   : > { %v774_v40 = vmax.f32 %v558_v36, 0.0  ;;  %v832_v44 = vpack.c.bf16 %v776_v37, %v775_v41  ;;  %v579_v49 = vadd.f32 %v2519_v38, %v3054_v47 }
  0xf6   : > { %v570_v42 = vpop.f32.mrf.mxu0 }
  0xf7   : > { %v831_v43 = vpack.c.bf16 %v774_v40, %v773_v39  ;;  %v571_v46 = vadd.f32 %v3054_v47, %v570_v42  ;;  %v779_v56 = vmax.f32 %v579_v49, 0.0 }
  0xf8   : > { %v2520_v45 = vpop.f32.mrf.mxu0 }
  0xf9   : > { %v582_v48 = vadd.f32 %v2520_v45, %v3054_v47  ;;  %2593 = vmatprep.mubr.bf16.mxu1 %v831_v43  ;;  %v777_v54 = vmax.f32 %v571_v46, 0.0 }
  0xfa   : > { %v573_v50 = vpop.f32.mrf.mxu0  ;;  %2594 = vmatmul.mubr.bf16.gmra.mxu1 %v832_v44 }
  0xfb   : > { %v574_v51 = vadd.f32 %v3054_v47, %v573_v50  ;;  %v780_v52 = vmax.f32 %v582_v48, 0.0 }
  0xfc   : > { %v2523_v53 = vpop.f32.mrf.mxu0 }
  0xfd   : > { %v778_v55 = vmax.f32 %v574_v51, 0.0  ;;  %v834_v59 = vpack.c.bf16 %v780_v52, %v779_v56  ;;  %v595_v63 = vadd.f32 %v2523_v53, %v3054_v47 }
  0xfe   : > { %v586_v57 = vpop.f32.mrf.mxu0 }
  0xff   : > { %v833_v58 = vpack.c.bf16 %v778_v55, %v777_v54  ;;  %v587_v61 = vadd.f32 %v3054_v47, %v586_v57  ;;  %v783_v6 = vmax.f32 %v595_v63, 0.0 }
 0x100   : > { %v2524_v60 = vpop.f32.mrf.mxu0 }
 0x101   : > { %v598_v62 = vadd.f32 %v2524_v60, %v3054_v47  ;;  %2597 = vmatprep.mubr.bf16.mxu1 %v833_v58  ;;  %v781_v4 = vmax.f32 %v587_v61, 0.0 }
 0x102   : > { %v589_v0 = vpop.f32.mrf.mxu0  ;;  %2598 = vmatmul.mubr.bf16.gmra.mxu1 %v834_v59 }
 0x103   : > { %v590_v1 = vadd.f32 %v3054_v47, %v589_v0  ;;  %v784_v2 = vmax.f32 %v598_v62, 0.0 }
 0x104   : > { %v2527_v3 = vpop.f32.mrf.mxu0 }
 0x105   : > { %v782_v5 = vmax.f32 %v590_v1, 0.0  ;;  %v836_v9 = vpack.c.bf16 %v784_v2, %v783_v6  ;;  %v611_v13 = vadd.f32 %v2527_v3, %v3054_v47 }
 0x106   : > { %v602_v7 = vpop.f32.mrf.mxu0 }
 0x107   : > { %v835_v8 = vpack.c.bf16 %v782_v5, %v781_v4  ;;  %v603_v11 = vadd.f32 %v3054_v47, %v602_v7  ;;  %v787_v20 = vmax.f32 %v611_v13, 0.0 }
 0x108   : > { %v2528_v10 = vpop.f32.mrf.mxu0 }
 0x109   : > { %v614_v12 = vadd.f32 %v2528_v10, %v3054_v47  ;;  %2601 = vmatprep.mubr.bf16.mxu1 %v835_v8  ;;  %v785_v18 = vmax.f32 %v603_v11, 0.0 }
 0x10a   : > { %v605_v14 = vpop.f32.mrf.mxu0  ;;  %2602 = vmatmul.mubr.bf16.gmra.mxu1 %v836_v9 }
 0x10b   : > { %v606_v15 = vadd.f32 %v3054_v47, %v605_v14  ;;  %v788_v16 = vmax.f32 %v614_v12, 0.0 }
 0x10c   : > { %v2531_v17 = vpop.f32.mrf.mxu0 }
 0x10d   : > { %v786_v19 = vmax.f32 %v606_v15, 0.0  ;;  %v838_v23 = vpack.c.bf16 %v788_v16, %v787_v20  ;;  %v627_v27 = vadd.f32 %v2531_v17, %v3054_v47 }
 0x10e   : > { %v618_v21 = vpop.f32.mrf.mxu0 }
 0x10f   : > { %v837_v22 = vpack.c.bf16 %v786_v19, %v785_v18  ;;  %v619_v25 = vadd.f32 %v3054_v47, %v618_v21  ;;  %v791_v34 = vmax.f32 %v627_v27, 0.0 }
 0x110   : > { %v2532_v24 = vpop.f32.mrf.mxu0 }
 0x111   : > { %v630_v26 = vadd.f32 %v2532_v24, %v3054_v47  ;;  %2605 = vmatprep.mubr.bf16.mxu1 %v837_v22  ;;  %v789_v32 = vmax.f32 %v619_v25, 0.0 }
 0x112   : > { %v621_v28 = vpop.f32.mrf.mxu0  ;;  %2606 = vmatmul.mubr.bf16.gmra.mxu1 %v838_v23 }
 0x113   : > { %v622_v29 = vadd.f32 %v3054_v47, %v621_v28  ;;  %v792_v30 = vmax.f32 %v630_v26, 0.0 }
 0x114   : > { %v2535_v31 = vpop.f32.mrf.mxu0 }
 0x115   : > { %v790_v33 = vmax.f32 %v622_v29, 0.0  ;;  %v840_v37 = vpack.c.bf16 %v792_v30, %v791_v34  ;;  %v643_v41 = vadd.f32 %v2535_v31, %v3054_v47 }
 0x116   : > { %v634_v35 = vpop.f32.mrf.mxu0 }
 0x117   : > { %v839_v36 = vpack.c.bf16 %v790_v33, %v789_v32  ;;  %v635_v39 = vadd.f32 %v3054_v47, %v634_v35  ;;  %v795_v49 = vmax.f32 %v643_v41, 0.0 }
 0x118   : > { %v2536_v38 = vpop.f32.mrf.mxu0 }
 0x119   : > { %v646_v40 = vadd.f32 %v2536_v38, %v3054_v47  ;;  %2609 = vmatprep.mubr.bf16.mxu1 %v839_v36  ;;  %v793_v46 = vmax.f32 %v635_v39, 0.0 }
 0x11a   : > { %v637_v42 = vpop.f32.mrf.mxu0  ;;  %2610 = vmatmul.mubr.bf16.gmra.mxu1 %v840_v37 }
 0x11b   : > { %v638_v43 = vadd.f32 %v3054_v47, %v637_v42  ;;  %v796_v44 = vmax.f32 %v646_v40, 0.0 }
 0x11c   : > { %v2539_v45 = vpop.f32.mrf.mxu0 }
 0x11d   : > { %v794_v48 = vmax.f32 %v638_v43, 0.0  ;;  %v842_v52 = vpack.c.bf16 %v796_v44, %v795_v49  ;;  %v659_v56 = vadd.f32 %v2539_v45, %v3054_v47 }
 0x11e   : > { %v650_v50 = vpop.f32.mrf.mxu0 }
 0x11f   : > { %v841_v51 = vpack.c.bf16 %v794_v48, %v793_v46  ;;  %v651_v54 = vadd.f32 %v3054_v47, %v650_v50  ;;  %v799_v63 = vmax.f32 %v659_v56, 0.0 }
 0x120   : > { %v2540_v53 = vpop.f32.mrf.mxu0 }
 0x121   : > { %v662_v55 = vadd.f32 %v2540_v53, %v3054_v47  ;;  %2613 = vmatprep.mubr.bf16.mxu1 %v841_v51  ;;  %v797_v61 = vmax.f32 %v651_v54, 0.0 }
 0x122   : > { %v653_v57 = vpop.f32.mrf.mxu0  ;;  %2614 = vmatmul.mubr.bf16.gmra.mxu1 %v842_v52 }
 0x123   : > { %v654_v58 = vadd.f32 %v3054_v47, %v653_v57  ;;  %v800_v59 = vmax.f32 %v662_v55, 0.0 }
 0x124   : > { %v2543_v60 = vpop.f32.mrf.mxu0 }
 0x125   : > { %v798_v62 = vmax.f32 %v654_v58, 0.0  ;;  %v844_v2 = vpack.c.bf16 %v800_v59, %v799_v63  ;;  %v675_v6 = vadd.f32 %v2543_v60, %v3054_v47 }
 0x126   : > { %v666_v0 = vpop.f32.mrf.mxu0 }
 0x127   : > { %v843_v1 = vpack.c.bf16 %v798_v62, %v797_v61  ;;  %v667_v4 = vadd.f32 %v3054_v47, %v666_v0  ;;  %v803_v13 = vmax.f32 %v675_v6, 0.0 }
 0x128   : > { %v2544_v3 = vpop.f32.mrf.mxu0 }
 0x129   : > { %v678_v5 = vadd.f32 %v2544_v3, %v3054_v47  ;;  %2617 = vmatprep.mubr.bf16.mxu1 %v843_v1  ;;  %v801_v11 = vmax.f32 %v667_v4, 0.0 }
 0x12a   : > { %v669_v7 = vpop.f32.mrf.mxu0  ;;  %2618 = vmatmul.mubr.bf16.gmra.mxu1 %v844_v2 }
 0x12b   : > { %v670_v8 = vadd.f32 %v3054_v47, %v669_v7  ;;  %v804_v9 = vmax.f32 %v678_v5, 0.0 }
 0x12c   : > { %v2547_v10 = vpop.f32.mrf.mxu0 }
 0x12d   : > { %v802_v12 = vmax.f32 %v670_v8, 0.0  ;;  %v846_v16 = vpack.c.bf16 %v804_v9, %v803_v13  ;;  %v691_v20 = vadd.f32 %v2547_v10, %v3054_v47 }
 0x12e   : > { %v682_v14 = vpop.f32.mrf.mxu0 }
 0x12f   : > { %v845_v15 = vpack.c.bf16 %v802_v12, %v801_v11  ;;  %v683_v18 = vadd.f32 %v3054_v47, %v682_v14  ;;  %v807_v27 = vmax.f32 %v691_v20, 0.0 }
 0x130   : > { %v2548_v17 = vpop.f32.mrf.mxu0 }
 0x131   : > { %v694_v19 = vadd.f32 %v2548_v17, %v3054_v47  ;;  %2621 = vmatprep.mubr.bf16.mxu1 %v845_v15  ;;  %v805_v25 = vmax.f32 %v683_v18, 0.0 }
 0x132   : > { %v685_v21 = vpop.f32.mrf.mxu0  ;;  %2622 = vmatmul.mubr.bf16.gmra.mxu1 %v846_v16 }
 0x133   : > { %v686_v22 = vadd.f32 %v3054_v47, %v685_v21  ;;  %v808_v23 = vmax.f32 %v694_v19, 0.0 }
 0x134   : > { %v2551_v24 = vpop.f32.mrf.mxu0 }
 0x135   : > { %v806_v26 = vmax.f32 %v686_v22, 0.0  ;;  %v848_v30 = vpack.c.bf16 %v808_v23, %v807_v27  ;;  %v707_v34 = vadd.f32 %v2551_v24, %v3054_v47  ;;  %v2847_v22 = vld [vmem:[%s3443_s3 + $0x38] sm:$0xff]   ;;  %v2848_v23 = vld [vmem:[%s3443_s3 + $0x30] sm:$0xff]  }
 0x136   : > { %v698_v28 = vpop.f32.mrf.mxu0  ;;  %2805 = vmatprep.subr.bf16.mxu1 %v2847_v22  ;;  %2725 = vmatprep.subr.bf16.mxu0 %v2847_v22 }
 0x137   : > { %v847_v29 = vpack.c.bf16 %v806_v26, %v805_v25  ;;  %v699_v32 = vadd.f32 %v3054_v47, %v698_v28  ;;  %v811_v41 = vmax.f32 %v707_v34, 0.0  ;;  %2813 = vmatpush3.bf16.msra.mxu1 %v2847_v22  ;;  %v3144_v25 = vld [vmem:[%s3444_s4 + $0x1] ss:$0 sm:$0xff]  ;;  %v2849_v26 = vld [vmem:[%s3443_s3 + $0x28] sm:$0xff]  }
 0x138   : > { %v2552_v31 = vpop.f32.mrf.mxu0  ;;  %2806 = vmatprep.subr.bf16.mxu1 %v2848_v23 }
 0x139   : > { %v710_v33 = vadd.f32 %v2552_v31, %v3054_v47  ;;  %2625 = vmatprep.mubr.bf16.mxu1 %v847_v29  ;;  %v809_v39 = vmax.f32 %v699_v32, 0.0  ;;  %v2850_v32 = vld [vmem:[%s3443_s3 + $0x20] sm:$0xff]  }
 0x13a   : > { %v701_v35 = vpop.f32.mrf.mxu0  ;;  %2626 = vmatmul.mubr.bf16.gmra.mxu1 %v848_v30 }
 0x13b   : > { %v702_v36 = vadd.f32 %v3054_v47, %v701_v35  ;;  %v812_v37 = vmax.f32 %v710_v33, 0.0  ;;  %2814 = vmatpush3.bf16.msra.mxu1 %v2848_v23 }
 0x13c   : > { %v2555_v38 = vpop.f32.mrf.mxu0  ;;  %2807 = vmatprep.subr.bf16.mxu1 %v2849_v26 }
 0x13d   : > { %v810_v40 = vmax.f32 %v702_v36, 0.0  ;;  %v850_v44 = vpack.c.bf16 %v812_v37, %v811_v41  ;;  %v723_v49 = vadd.f32 %v2555_v38, %v3054_v47  ;;  %v2851_v38 = vld [vmem:[%s3443_s3 + $0x18] sm:$0xff]  }
 0x13e   : > { %v714_v42 = vpop.f32.mrf.mxu0 }
 0x13f   : > { %v849_v43 = vpack.c.bf16 %v810_v40, %v809_v39  ;;  %v715_v46 = vadd.f32 %v3054_v47, %v714_v42  ;;  %v815_v56 = vmax.f32 %v723_v49, 0.0  ;;  %2815 = vmatpush3.bf16.msra.mxu1 %v2849_v26 }
 0x140   : > { %v2556_v45 = vpop.f32.mrf.mxu0  ;;  %2808 = vmatprep.subr.bf16.mxu1 %v2850_v32 }
 0x141   : > { %v726_v48 = vadd.f32 %v2556_v45, %v3054_v47  ;;  %2629 = vmatprep.mubr.bf16.mxu1 %v849_v43  ;;  %v813_v54 = vmax.f32 %v715_v46, 0.0  ;;  %v2852_v46 = vld [vmem:[%s3443_s3 + $0x10] sm:$0xff]  }
 0x142   : > { %v717_v50 = vpop.f32.mrf.mxu0  ;;  %2630 = vmatmul.mubr.bf16.gmra.mxu1 %v850_v44 }
 0x143   : > { %v718_v51 = vadd.f32 %v3054_v47, %v717_v50  ;;  %v816_v52 = vmax.f32 %v726_v48, 0.0  ;;  %2816 = vmatpush3.bf16.msra.mxu1 %v2850_v32 }
 0x144   : > { %v2559_v53 = vpop.f32.mrf.mxu0  ;;  %2809 = vmatprep.subr.bf16.mxu1 %v2851_v38 }
 0x145   : > { %v814_v55 = vmax.f32 %v718_v51, 0.0  ;;  %v852_v59 = vpack.c.bf16 %v816_v52, %v815_v56  ;;  %v739_v63 = vadd.f32 %v2559_v53, %v3054_v47 }
 0x146   : > { %v730_v57 = vpop.f32.mrf.mxu0 }
 0x147   : > { %v851_v58 = vpack.c.bf16 %v814_v55, %v813_v54  ;;  %v731_v61 = vadd.f32 %v3054_v47, %v730_v57  ;;  %v819_v6 = vmax.f32 %v739_v63, 0.0  ;;  %2817 = vmatpush3.bf16.msra.mxu1 %v2851_v38  ;;  %v2853_v55 = vld [vmem:[%s3443_s3 + $0x8] sm:$0xff]  }
 0x148   : > { %v2560_v60 = vpop.f32.mrf.mxu0  ;;  %2810 = vmatprep.subr.bf16.mxu1 %v2852_v46 }
 0x149   : > { %v742_v62 = vadd.f32 %v2560_v60, %v3054_v47  ;;  %2633 = vmatprep.mubr.bf16.mxu1 %v851_v58  ;;  %v817_v4 = vmax.f32 %v731_v61, 0.0 }
 0x14a   : > { %v733_v0 = vpop.f32.mrf.mxu0  ;;  %2634 = vmatmul.mubr.bf16.gmra.mxu1 %v852_v59 }
 0x14b   : > { %v734_v1 = vadd.f32 %v3054_v47, %v733_v0  ;;  %v820_v2 = vmax.f32 %v742_v62, 0.0  ;;  %2818 = vmatpush3.bf16.msra.mxu1 %v2852_v46 }
 0x14c   : > { %v2563_v3 = vpop.f32.mrf.mxu0  ;;  %2811 = vmatprep.subr.bf16.mxu1 %v2853_v55 }
 0x14d   : > { %v818_v5 = vmax.f32 %v734_v1, 0.0  ;;  %v854_v9 = vpack.c.bf16 %v820_v2, %v819_v6  ;;  %v755_v13 = vadd.f32 %v2563_v3, %v3054_v47 }
 0x14e   : > { %v746_v7 = vpop.f32.mrf.mxu0 }
 0x14f   : > { %v853_v8 = vpack.c.bf16 %v818_v5, %v817_v4  ;;  %v747_v11 = vadd.f32 %v3054_v47, %v746_v7  ;;  %v823_v19 = vmax.f32 %v755_v13, 0.0  ;;  %2819 = vmatpush3.bf16.msra.mxu1 %v2853_v55 }
 0x150   : > { %v2564_v10 = vpop.f32.mrf.mxu0 }
 0x151   : > { %v758_v12 = vadd.f32 %v2564_v10, %v3054_v47  ;;  %2637 = vmatprep.mubr.bf16.mxu1 %v853_v8  ;;  %v821_v17 = vmax.f32 %v747_v11, 0.0 }
 0x152   : > { %v749_v14 = vpop.f32.mrf.mxu0  ;;  %2638 = vmatmul.mubr.bf16.gmra.mxu1 %v854_v9 }
 0x153   : > { %v750_v15 = vadd.f32 %v3054_v47, %v749_v14  ;;  %v824_v16 = vmax.f32 %v758_v12, 0.0 }
 0x155   : > { %v822_v18 = vmax.f32 %v750_v15, 0.0  ;;  %v856_v21 = vpack.c.bf16 %v824_v16, %v823_v19 }
 0x157   : > { %v855_v20 = vpack.c.bf16 %v822_v18, %v821_v17 }
 0x159   : > { %2641 = vmatprep.mubr.bf16.mxu1 %v855_v20 }
 0x15a   : > { %2642 = vmatmul.mubr.bf16.gmra.mxu1 %v856_v21 }
 0x1a2   : > { %v2583_v47 = vpop.f32.mrf.mxu1 }
 0x1a3   : > { %v972_v30 = vadd.f32 %v2583_v47, %v3144_v25 }
 0x1a4   : > { %v963_v24 = vpop.f32.mrf.mxu1 }
 0x1a5   : > { %v964_v28 = vadd.f32 %v3144_v25, %v963_v24  ;;  %v1220_v39 = vmax.f32 %v972_v30, 0.0 }
 0x1a6   : > { %v2584_v27 = vpop.f32.mrf.mxu1 }
 0x1a7   : > { %v975_v29 = vadd.f32 %v2584_v27, %v3144_v25  ;;  %v1218_v36 = vmax.f32 %v964_v28, 0.0 }
 0x1a8   : > { %v966_v31 = vpop.f32.mrf.mxu1 }
 0x1a9   : > { %v967_v33 = vadd.f32 %v3144_v25, %v966_v31  ;;  %v1221_v34 = vmax.f32 %v975_v29, 0.0 }
 0x1aa   : > { %v2587_v35 = vpop.f32.mrf.mxu1 }
 0x1ab   : > { %v1219_v37 = vmax.f32 %v967_v33, 0.0  ;;  %v1283_v42 = vpack.c.bf16 %v1221_v34, %v1220_v39  ;;  %v988_v48 = vadd.f32 %v2587_v35, %v3144_v25 }
 0x1ac   : > { %v979_v40 = vpop.f32.mrf.mxu1 }
 0x1ad   : > { %v1282_v41 = vpack.c.bf16 %v1219_v37, %v1218_v36  ;;  %v980_v44 = vadd.f32 %v3144_v25, %v979_v40  ;;  %v1224_v56 = vmax.f32 %v988_v48, 0.0 }
 0x1ae   : > { %v2588_v43 = vpop.f32.mrf.mxu1 }
 0x1af   : > { %v991_v45 = vadd.f32 %v2588_v43, %v3144_v25  ;;  %2661 = vmatprep.mubr.bf16.mxu0 %v1282_v41  ;;  %v1222_v53 = vmax.f32 %v980_v44, 0.0 }
 0x1b0   : > { %v982_v49 = vpop.f32.mrf.mxu1  ;;  %2662 = vmatmul.mubr.bf16.vlgmr.msra.gmra.mxu0 %v1283_v42 }
 0x1b1   : > { %v983_v50 = vadd.f32 %v3144_v25, %v982_v49  ;;  %2726 = vmatpush3.bf16.msra.mxu0 %v2847_v22  ;;  %v1225_v51 = vmax.f32 %v991_v45, 0.0 }
 0x1b2   : > { %v2591_v52 = vpop.f32.mrf.mxu1  ;;  %2727 = vmatprep.subr.bf16.mxu0 %v2848_v23 }
 0x1b3   : > { %v1223_v54 = vmax.f32 %v983_v50, 0.0  ;;  %v1285_v59 = vpack.c.bf16 %v1225_v51, %v1224_v56  ;;  %v1004_v63 = vadd.f32 %v2591_v52, %v3144_v25 }
 0x1b4   : > { %v995_v57 = vpop.f32.mrf.mxu1 }
 0x1b5   : > { %v1284_v58 = vpack.c.bf16 %v1223_v54, %v1222_v53  ;;  %2728 = vmatpush3.bf16.msra.mxu0 %v2848_v23  ;;  %v996_v61 = vadd.f32 %v3144_v25, %v995_v57  ;;  %v1228_v6 = vmax.f32 %v1004_v63, 0.0 }
 0x1b6   : > { %v2592_v60 = vpop.f32.mrf.mxu1  ;;  %2729 = vmatprep.subr.bf16.mxu0 %v2849_v26 }
 0x1b7   : > { %v1007_v62 = vadd.f32 %v2592_v60, %v3144_v25  ;;  %2665 = vmatprep.mubr.bf16.mxu0 %v1284_v58  ;;  %v1226_v4 = vmax.f32 %v996_v61, 0.0 }
 0x1b8   : > { %v998_v0 = vpop.f32.mrf.mxu1  ;;  %2666 = vmatmul.mubr.bf16.gmra.mxu0 %v1285_v59 }
 0x1b9   : > { %v999_v1 = vadd.f32 %v3144_v25, %v998_v0  ;;  %2730 = vmatpush3.bf16.msra.mxu0 %v2849_v26  ;;  %v1229_v2 = vmax.f32 %v1007_v62, 0.0 }
 0x1ba   : > { %v2595_v3 = vpop.f32.mrf.mxu1  ;;  %2731 = vmatprep.subr.bf16.mxu0 %v2850_v32 }
 0x1bb   : > { %v1227_v5 = vmax.f32 %v999_v1, 0.0  ;;  %v1287_v9 = vpack.c.bf16 %v1229_v2, %v1228_v6  ;;  %v1020_v13 = vadd.f32 %v2595_v3, %v3144_v25 }
 0x1bc   : > { %v1011_v7 = vpop.f32.mrf.mxu1 }
 0x1bd   : > { %v1286_v8 = vpack.c.bf16 %v1227_v5, %v1226_v4  ;;  %2732 = vmatpush3.bf16.msra.mxu0 %v2850_v32  ;;  %v1012_v11 = vadd.f32 %v3144_v25, %v1011_v7  ;;  %v1232_v20 = vmax.f32 %v1020_v13, 0.0 }
 0x1be   : > { %v2596_v10 = vpop.f32.mrf.mxu1  ;;  %2733 = vmatprep.subr.bf16.mxu0 %v2851_v38 }
 0x1bf   : > { %v1023_v12 = vadd.f32 %v2596_v10, %v3144_v25  ;;  %2669 = vmatprep.mubr.bf16.mxu0 %v1286_v8  ;;  %v1230_v18 = vmax.f32 %v1012_v11, 0.0 }
 0x1c0   : > { %v1014_v14 = vpop.f32.mrf.mxu1  ;;  %2670 = vmatmul.mubr.bf16.gmra.mxu0 %v1287_v9 }
 0x1c1   : > { %v1015_v15 = vadd.f32 %v3144_v25, %v1014_v14  ;;  %2734 = vmatpush3.bf16.msra.mxu0 %v2851_v38  ;;  %v1233_v16 = vmax.f32 %v1023_v12, 0.0 }
 0x1c2   : > { %v2599_v17 = vpop.f32.mrf.mxu1  ;;  %2735 = vmatprep.subr.bf16.mxu0 %v2852_v46 }
 0x1c3   : > { %v1231_v19 = vmax.f32 %v1015_v15, 0.0  ;;  %v1289_v23 = vpack.c.bf16 %v1233_v16, %v1232_v20  ;;  %v1036_v27 = vadd.f32 %v2599_v17, %v3144_v25 }
 0x1c4   : > { %v1027_v21 = vpop.f32.mrf.mxu1 }
 0x1c5   : > { %v1288_v22 = vpack.c.bf16 %v1231_v19, %v1230_v18  ;;  %2736 = vmatpush3.bf16.msra.mxu0 %v2852_v46  ;;  %v1028_v24 = vadd.f32 %v3144_v25, %v1027_v21  ;;  %v1236_v34 = vmax.f32 %v1036_v27, 0.0 }
 0x1c6   : > { %v2600_v47 = vpop.f32.mrf.mxu1  ;;  %2737 = vmatprep.subr.bf16.mxu0 %v2853_v55 }
 0x1c7   : > { %v1039_v26 = vadd.f32 %v2600_v47, %v3144_v25  ;;  %2673 = vmatprep.mubr.bf16.mxu0 %v1288_v22  ;;  %v1234_v32 = vmax.f32 %v1028_v24, 0.0 }
 0x1c8   : > { %v1030_v28 = vpop.f32.mrf.mxu1  ;;  %2674 = vmatmul.mubr.bf16.gmra.mxu0 %v1289_v23 }
 0x1c9   : > { %v1031_v29 = vadd.f32 %v3144_v25, %v1030_v28  ;;  %2738 = vmatpush3.bf16.msra.mxu0 %v2853_v55  ;;  %v1237_v30 = vmax.f32 %v1039_v26, 0.0 }
 0x1ca   : > { %v2603_v31 = vpop.f32.mrf.mxu1 }
 0x1cb   : > { %v1235_v33 = vmax.f32 %v1031_v29, 0.0  ;;  %v1291_v37 = vpack.c.bf16 %v1237_v30, %v1236_v34  ;;  %v1052_v41 = vadd.f32 %v2603_v31, %v3144_v25 }
 0x1cc   : > { %v1043_v35 = vpop.f32.mrf.mxu1 }
 0x1cd   : > { %v1290_v36 = vpack.c.bf16 %v1235_v33, %v1234_v32  ;;  %v1044_v39 = vadd.f32 %v3144_v25, %v1043_v35  ;;  %v1240_v49 = vmax.f32 %v1052_v41, 0.0 }
 0x1ce   : > { %v2604_v38 = vpop.f32.mrf.mxu1 }
 0x1cf   : > { %v1055_v40 = vadd.f32 %v2604_v38, %v3144_v25  ;;  %2677 = vmatprep.mubr.bf16.mxu0 %v1290_v36  ;;  %v1238_v46 = vmax.f32 %v1044_v39, 0.0 }
 0x1d0   : > { %v1046_v42 = vpop.f32.mrf.mxu1  ;;  %2678 = vmatmul.mubr.bf16.gmra.mxu0 %v1291_v37 }
 0x1d1   : > { %v1047_v43 = vadd.f32 %v3144_v25, %v1046_v42  ;;  %v1241_v44 = vmax.f32 %v1055_v40, 0.0 }
 0x1d2   : > { %v2607_v45 = vpop.f32.mrf.mxu1 }
 0x1d3   : > { %v1239_v48 = vmax.f32 %v1047_v43, 0.0  ;;  %v1293_v52 = vpack.c.bf16 %v1241_v44, %v1240_v49  ;;  %v1068_v56 = vadd.f32 %v2607_v45, %v3144_v25 }
 0x1d4   : > { %v1059_v50 = vpop.f32.mrf.mxu1 }
 0x1d5   : > { %v1292_v51 = vpack.c.bf16 %v1239_v48, %v1238_v46  ;;  %v1060_v54 = vadd.f32 %v3144_v25, %v1059_v50  ;;  %v1244_v63 = vmax.f32 %v1068_v56, 0.0 }
 0x1d6   : > { %v2608_v53 = vpop.f32.mrf.mxu1 }
 0x1d7   : > { %v1071_v55 = vadd.f32 %v2608_v53, %v3144_v25  ;;  %2681 = vmatprep.mubr.bf16.mxu0 %v1292_v51  ;;  %v1242_v61 = vmax.f32 %v1060_v54, 0.0  ;;  %v2854_v51 = vld [vmem:[%s3443_s3] sm:$0xff]  }
 0x1d8   : > { %v1062_v57 = vpop.f32.mrf.mxu1  ;;  %2682 = vmatmul.mubr.bf16.gmra.mxu0 %v1293_v52  ;;  %2812 = vmatprep.subr.bf16.mxu1 %v2854_v51 }
 0x1d9   : > { %v1063_v58 = vadd.f32 %v3144_v25, %v1062_v57  ;;  %v1245_v59 = vmax.f32 %v1071_v55, 0.0  ;;  %2739 = vmatprep.subr.bf16.mxu0 %v2854_v51  ;;  %2820 = vmatpush3.bf16.msra.mxu1 %v2854_v51 }
 0x1da   : > { %v2611_v60 = vpop.f32.mrf.mxu1  ;;  %2740 = vmatpush3.bf16.msra.mxu0 %v2854_v51 }
 0x1db   : > { %v1243_v62 = vmax.f32 %v1063_v58, 0.0  ;;  %v1295_v2 = vpack.c.bf16 %v1245_v59, %v1244_v63  ;;  %v1084_v6 = vadd.f32 %v2611_v60, %v3144_v25 }
 0x1dc   : > { %v1075_v0 = vpop.f32.mrf.mxu1 }
 0x1dd   : > { %v1294_v1 = vpack.c.bf16 %v1243_v62, %v1242_v61  ;;  %v1076_v4 = vadd.f32 %v3144_v25, %v1075_v0  ;;  %v1248_v13 = vmax.f32 %v1084_v6, 0.0 }
 0x1de   : > { %v2612_v3 = vpop.f32.mrf.mxu1 }
 0x1df   : > { %v1087_v5 = vadd.f32 %v2612_v3, %v3144_v25  ;;  %2685 = vmatprep.mubr.bf16.mxu0 %v1294_v1  ;;  %v1246_v11 = vmax.f32 %v1076_v4, 0.0 }
 0x1e0   : > { %v1078_v7 = vpop.f32.mrf.mxu1  ;;  %2686 = vmatmul.mubr.bf16.gmra.mxu0 %v1295_v2 }
 0x1e1   : > { %v1079_v8 = vadd.f32 %v3144_v25, %v1078_v7  ;;  %v1249_v9 = vmax.f32 %v1087_v5, 0.0 }
 0x1e2   : > { %v2615_v10 = vpop.f32.mrf.mxu1 }
 0x1e3   : > { %v1247_v12 = vmax.f32 %v1079_v8, 0.0  ;;  %v1297_v16 = vpack.c.bf16 %v1249_v9, %v1248_v13  ;;  %v1100_v20 = vadd.f32 %v2615_v10, %v3144_v25 }
 0x1e4   : > { %v1091_v14 = vpop.f32.mrf.mxu1 }
 0x1e5   : > { %v1296_v15 = vpack.c.bf16 %v1247_v12, %v1246_v11  ;;  %v1092_v18 = vadd.f32 %v3144_v25, %v1091_v14  ;;  %v1252_v27 = vmax.f32 %v1100_v20, 0.0 }
 0x1e6   : > { %v2616_v17 = vpop.f32.mrf.mxu1 }
 0x1e7   : > { %v1103_v19 = vadd.f32 %v2616_v17, %v3144_v25  ;;  %2689 = vmatprep.mubr.bf16.mxu0 %v1296_v15  ;;  %v1250_v24 = vmax.f32 %v1092_v18, 0.0 }
 0x1e8   : > { %v1094_v21 = vpop.f32.mrf.mxu1  ;;  %2690 = vmatmul.mubr.bf16.gmra.mxu0 %v1297_v16 }
 0x1e9   : > { %v1095_v22 = vadd.f32 %v3144_v25, %v1094_v21  ;;  %v1253_v23 = vmax.f32 %v1103_v19, 0.0 }
 0x1ea   : > { %v2619_v47 = vpop.f32.mrf.mxu1 }
 0x1eb   : > { %v1251_v26 = vmax.f32 %v1095_v22, 0.0  ;;  %v1299_v30 = vpack.c.bf16 %v1253_v23, %v1252_v27  ;;  %v1116_v34 = vadd.f32 %v2619_v47, %v3144_v25 }
 0x1ec   : > { %v1107_v28 = vpop.f32.mrf.mxu1 }
 0x1ed   : > { %v1298_v29 = vpack.c.bf16 %v1251_v26, %v1250_v24  ;;  %v1108_v32 = vadd.f32 %v3144_v25, %v1107_v28  ;;  %v1256_v41 = vmax.f32 %v1116_v34, 0.0 }
 0x1ee   : > { %v2620_v31 = vpop.f32.mrf.mxu1 }
 0x1ef   : > { %v1119_v33 = vadd.f32 %v2620_v31, %v3144_v25  ;;  %2693 = vmatprep.mubr.bf16.mxu0 %v1298_v29  ;;  %v1254_v39 = vmax.f32 %v1108_v32, 0.0 }
 0x1f0   : > { %v1110_v35 = vpop.f32.mrf.mxu1  ;;  %2694 = vmatmul.mubr.bf16.gmra.mxu0 %v1299_v30 }
 0x1f1   : > { %v1111_v36 = vadd.f32 %v3144_v25, %v1110_v35  ;;  %v1257_v37 = vmax.f32 %v1119_v33, 0.0 }
 0x1f2   : > { %v2623_v38 = vpop.f32.mrf.mxu1 }
 0x1f3   : > { %v1255_v40 = vmax.f32 %v1111_v36, 0.0  ;;  %v1301_v44 = vpack.c.bf16 %v1257_v37, %v1256_v41  ;;  %v1132_v49 = vadd.f32 %v2623_v38, %v3144_v25 }
 0x1f4   : > { %v1123_v42 = vpop.f32.mrf.mxu1 }
 0x1f5   : > { %v1300_v43 = vpack.c.bf16 %v1255_v40, %v1254_v39  ;;  %v1124_v46 = vadd.f32 %v3144_v25, %v1123_v42  ;;  %v1260_v57 = vmax.f32 %v1132_v49, 0.0 }
 0x1f6   : > { %v2624_v45 = vpop.f32.mrf.mxu1 }
 0x1f7   : > { %v1135_v48 = vadd.f32 %v2624_v45, %v3144_v25  ;;  %2697 = vmatprep.mubr.bf16.mxu0 %v1300_v43  ;;  %v1258_v55 = vmax.f32 %v1124_v46, 0.0 }
 0x1f8   : > { %v1126_v50 = vpop.f32.mrf.mxu1  ;;  %2698 = vmatmul.mubr.bf16.gmra.mxu0 %v1301_v44 }
 0x1f9   : > { %v1127_v52 = vadd.f32 %v3144_v25, %v1126_v50  ;;  %v1261_v53 = vmax.f32 %v1135_v48, 0.0 }
 0x1fa   : > { %v2627_v54 = vpop.f32.mrf.mxu1 }
 0x1fb   : > { %v1259_v56 = vmax.f32 %v1127_v52, 0.0  ;;  %v1303_v60 = vpack.c.bf16 %v1261_v53, %v1260_v57  ;;  %v1148_v0 = vadd.f32 %v2627_v54, %v3144_v25 }
 0x1fc   : > { %v1139_v58 = vpop.f32.mrf.mxu1 }
 0x1fd   : > { %v1302_v59 = vpack.c.bf16 %v1259_v56, %v1258_v55  ;;  %v1140_v62 = vadd.f32 %v3144_v25, %v1139_v58  ;;  %v1264_v7 = vmax.f32 %v1148_v0, 0.0 }
 0x1fe   : > { %v2628_v61 = vpop.f32.mrf.mxu1 }
 0x1ff   : > { %v1151_v63 = vadd.f32 %v2628_v61, %v3144_v25  ;;  %2701 = vmatprep.mubr.bf16.mxu0 %v1302_v59  ;;  %v1262_v5 = vmax.f32 %v1140_v62, 0.0 }
 0x200   : > { %v1142_v1 = vpop.f32.mrf.mxu1  ;;  %2702 = vmatmul.mubr.bf16.gmra.mxu0 %v1303_v60 }
 0x201   : > { %v1143_v2 = vadd.f32 %v3144_v25, %v1142_v1  ;;  %v1265_v3 = vmax.f32 %v1151_v63, 0.0 }
 0x202   : > { %v2631_v4 = vpop.f32.mrf.mxu1 }
 0x203   : > { %v1263_v6 = vmax.f32 %v1143_v2, 0.0  ;;  %v1305_v10 = vpack.c.bf16 %v1265_v3, %v1264_v7  ;;  %v1164_v14 = vadd.f32 %v2631_v4, %v3144_v25  ;;  %v3231_v4 = vld [vmem:[%s3444_s4 + $0x2] ss:$0 sm:$0xff] }
 0x204   : > { %v1155_v8 = vpop.f32.mrf.mxu1 }
 0x205   : > { %v1304_v9 = vpack.c.bf16 %v1263_v6, %v1262_v5  ;;  %v1156_v12 = vadd.f32 %v3144_v25, %v1155_v8  ;;  %v1268_v21 = vmax.f32 %v1164_v14, 0.0 }
 0x206   : > { %v2632_v11 = vpop.f32.mrf.mxu1 }
 0x207   : > { %v1167_v13 = vadd.f32 %v2632_v11, %v3144_v25  ;;  %2705 = vmatprep.mubr.bf16.mxu0 %v1304_v9  ;;  %v1266_v19 = vmax.f32 %v1156_v12, 0.0 }
 0x208   : > { %v1158_v15 = vpop.f32.mrf.mxu1  ;;  %2706 = vmatmul.mubr.bf16.gmra.mxu0 %v1305_v10 }
 0x209   : > { %v1159_v16 = vadd.f32 %v3144_v25, %v1158_v15  ;;  %v1269_v17 = vmax.f32 %v1167_v13, 0.0 }
 0x20a   : > { %v2635_v18 = vpop.f32.mrf.mxu1 }
 0x20b   : > { %v1267_v20 = vmax.f32 %v1159_v16, 0.0  ;;  %v1307_v47 = vpack.c.bf16 %v1269_v17, %v1268_v21  ;;  %v1180_v28 = vadd.f32 %v2635_v18, %v3144_v25 }
 0x20c   : > { %v1171_v22 = vpop.f32.mrf.mxu1 }
 0x20d   : > { %v1306_v23 = vpack.c.bf16 %v1267_v20, %v1266_v19  ;;  %v1172_v26 = vadd.f32 %v3144_v25, %v1171_v22  ;;  %v1272_v35 = vmax.f32 %v1180_v28, 0.0 }
 0x20e   : > { %v2636_v24 = vpop.f32.mrf.mxu1 }
 0x20f   : > { %v1183_v27 = vadd.f32 %v2636_v24, %v3144_v25  ;;  %2709 = vmatprep.mubr.bf16.mxu0 %v1306_v23  ;;  %v1270_v33 = vmax.f32 %v1172_v26, 0.0 }
 0x210   : > { %v1174_v29 = vpop.f32.mrf.mxu1  ;;  %2710 = vmatmul.mubr.bf16.gmra.mxu0 %v1307_v47 }
 0x211   : > { %v1175_v30 = vadd.f32 %v3144_v25, %v1174_v29  ;;  %v1273_v31 = vmax.f32 %v1183_v27, 0.0 }
 0x212   : > { %v2639_v32 = vpop.f32.mrf.mxu1 }
 0x213   : > { %v1271_v34 = vmax.f32 %v1175_v30, 0.0  ;;  %v1309_v38 = vpack.c.bf16 %v1273_v31, %v1272_v35  ;;  %v1196_v42 = vadd.f32 %v2639_v32, %v3144_v25 }
 0x214   : > { %v1187_v36 = vpop.f32.mrf.mxu1 }
 0x215   : > { %v1308_v37 = vpack.c.bf16 %v1271_v34, %v1270_v33  ;;  %v1188_v40 = vadd.f32 %v3144_v25, %v1187_v36  ;;  %v1276_v50 = vmax.f32 %v1196_v42, 0.0 }
 0x216   : > { %v2640_v39 = vpop.f32.mrf.mxu1 }
 0x217   : > { %v1199_v41 = vadd.f32 %v2640_v39, %v3144_v25  ;;  %2713 = vmatprep.mubr.bf16.mxu0 %v1308_v37  ;;  %v1274_v48 = vmax.f32 %v1188_v40, 0.0 }
 0x218   : > { %v1190_v43 = vpop.f32.mrf.mxu1  ;;  %2714 = vmatmul.mubr.bf16.gmra.mxu0 %v1309_v38 }
 0x219   : > { %v1191_v44 = vadd.f32 %v3144_v25, %v1190_v43  ;;  %v1277_v45 = vmax.f32 %v1199_v41, 0.0 }
 0x21a   : > { %v2643_v46 = vpop.f32.mrf.mxu1 }
 0x21b   : > { %v1275_v49 = vmax.f32 %v1191_v44, 0.0  ;;  %v1311_v53 = vpack.c.bf16 %v1277_v45, %v1276_v50  ;;  %v1212_v57 = vadd.f32 %v2643_v46, %v3144_v25 }
 0x21c   : > { %v1203_v51 = vpop.f32.mrf.mxu1 }
 0x21d   : > { %v1310_v52 = vpack.c.bf16 %v1275_v49, %v1274_v48  ;;  %v1204_v55 = vadd.f32 %v3144_v25, %v1203_v51  ;;  %v1280_v63 = vmax.f32 %v1212_v57, 0.0 }
 0x21e   : > { %v2644_v54 = vpop.f32.mrf.mxu1 }
 0x21f   : > { %v1215_v56 = vadd.f32 %v2644_v54, %v3144_v25  ;;  %2717 = vmatprep.mubr.bf16.mxu0 %v1310_v52  ;;  %v1278_v61 = vmax.f32 %v1204_v55, 0.0 }
 0x220   : > { %v1206_v58 = vpop.f32.mrf.mxu1  ;;  %2718 = vmatmul.mubr.bf16.gmra.mxu0 %v1311_v53 }
 0x221   : > { %v1207_v59 = vadd.f32 %v3144_v25, %v1206_v58  ;;  %v1281_v60 = vmax.f32 %v1215_v56, 0.0 }
 0x223   : > { %v1279_v62 = vmax.f32 %v1207_v59, 0.0  ;;  %v1313_v1 = vpack.c.bf16 %v1281_v60, %v1280_v63 }
 0x225   : > { %v1312_v0 = vpack.c.bf16 %v1279_v62, %v1278_v61 }
 0x227   : > { %2721 = vmatprep.mubr.bf16.mxu0 %v1312_v0 }
 0x228   : > { %2722 = vmatmul.mubr.bf16.gmra.mxu0 %v1313_v1 }
 0x270   : > { %v2663_v2 = vpop.f32.mrf.mxu0 }
 0x271   : > { %v1430_v7 = vadd.f32 %v2663_v2, %v3231_v4 }
 0x272   : > { %v1421_v3 = vpop.f32.mrf.mxu0 }
 0x273   : > { %v1422_v6 = vadd.f32 %v3231_v4, %v1421_v3  ;;  %v1678_v14 = vmax.f32 %v1430_v7, 0.0 }
 0x274   : > { %v2664_v5 = vpop.f32.mrf.mxu0 }
 0x275   : > { %v1433_v25 = vadd.f32 %v2664_v5, %v3231_v4  ;;  %v1676_v12 = vmax.f32 %v1422_v6, 0.0 }
 0x276   : > { %v1424_v8 = vpop.f32.mrf.mxu0 }
 0x277   : > { %v1425_v9 = vadd.f32 %v3231_v4, %v1424_v8  ;;  %v1679_v10 = vmax.f32 %v1433_v25, 0.0 }
 0x278   : > { %v2667_v11 = vpop.f32.mrf.mxu0 }
 0x279   : > { %v1677_v13 = vmax.f32 %v1425_v9, 0.0  ;;  %v1741_v17 = vpack.c.bf16 %v1679_v10, %v1678_v14  ;;  %v1446_v21 = vadd.f32 %v2667_v11, %v3231_v4 }
 0x27a   : > { %v1437_v15 = vpop.f32.mrf.mxu0 }
 0x27b   : > { %v1740_v16 = vpack.c.bf16 %v1677_v13, %v1676_v12  ;;  %v1438_v19 = vadd.f32 %v3231_v4, %v1437_v15  ;;  %v1682_v28 = vmax.f32 %v1446_v21, 0.0 }
 0x27c   : > { %v2668_v18 = vpop.f32.mrf.mxu0 }
 0x27d   : > { %v1449_v20 = vadd.f32 %v2668_v18, %v3231_v4  ;;  %2741 = vmatprep.mubr.bf16.mxu0 %v1740_v16  ;;  %v1680_v26 = vmax.f32 %v1438_v19, 0.0 }
 0x27e   : > { %v1440_v22 = vpop.f32.mrf.mxu0  ;;  %2742 = vmatmul.mubr.bf16.vlgmr.msra.gmra.mxu0 %v1741_v17 }
 0x27f   : > { %v1441_v23 = vadd.f32 %v3231_v4, %v1440_v22  ;;  %v1683_v47 = vmax.f32 %v1449_v20, 0.0 }
 0x280   : > { %v2671_v24 = vpop.f32.mrf.mxu0 }
 0x281   : > { %v1681_v27 = vmax.f32 %v1441_v23, 0.0  ;;  %v1743_v31 = vpack.c.bf16 %v1683_v47, %v1682_v28  ;;  %v1462_v35 = vadd.f32 %v2671_v24, %v3231_v4 }
 0x282   : > { %v1453_v29 = vpop.f32.mrf.mxu0 }
 0x283   : > { %v1742_v30 = vpack.c.bf16 %v1681_v27, %v1680_v26  ;;  %v1454_v33 = vadd.f32 %v3231_v4, %v1453_v29  ;;  %v1686_v42 = vmax.f32 %v1462_v35, 0.0 }
 0x284   : > { %v2672_v32 = vpop.f32.mrf.mxu0 }
 0x285   : > { %v1465_v34 = vadd.f32 %v2672_v32, %v3231_v4  ;;  %2745 = vmatprep.mubr.bf16.mxu1 %v1742_v30  ;;  %v1684_v40 = vmax.f32 %v1454_v33, 0.0 }
 0x286   : > { %v1456_v36 = vpop.f32.mrf.mxu0  ;;  %2746 = vmatmul.mubr.bf16.vlgmr.msra.gmra.mxu1 %v1743_v31 }
 0x287   : > { %v1457_v37 = vadd.f32 %v3231_v4, %v1456_v36  ;;  %v1687_v38 = vmax.f32 %v1465_v34, 0.0 }
 0x288   : > { %v2675_v39 = vpop.f32.mrf.mxu0 }
 0x289   : > { %v1685_v41 = vmax.f32 %v1457_v37, 0.0  ;;  %v1745_v45 = vpack.c.bf16 %v1687_v38, %v1686_v42  ;;  %v1478_v50 = vadd.f32 %v2675_v39, %v3231_v4 }
 0x28a   : > { %v1469_v43 = vpop.f32.mrf.mxu0 }
 0x28b   : > { %v1744_v44 = vpack.c.bf16 %v1685_v41, %v1684_v40  ;;  %v1470_v48 = vadd.f32 %v3231_v4, %v1469_v43  ;;  %v1690_v57 = vmax.f32 %v1478_v50, 0.0 }
 0x28c   : > { %v2676_v46 = vpop.f32.mrf.mxu0 }
 0x28d   : > { %v1481_v49 = vadd.f32 %v2676_v46, %v3231_v4  ;;  %2749 = vmatprep.mubr.bf16.mxu1 %v1744_v44  ;;  %v1688_v55 = vmax.f32 %v1470_v48, 0.0 }
 0x28e   : > { %v1472_v51 = vpop.f32.mrf.mxu0  ;;  %2750 = vmatmul.mubr.bf16.gmra.mxu1 %v1745_v45 }
 0x28f   : > { %v1473_v52 = vadd.f32 %v3231_v4, %v1472_v51  ;;  %v1691_v53 = vmax.f32 %v1481_v49, 0.0 }
 0x290   : > { %v2679_v54 = vpop.f32.mrf.mxu0 }
 0x291   : > { %v1689_v56 = vmax.f32 %v1473_v52, 0.0  ;;  %v1747_v60 = vpack.c.bf16 %v1691_v53, %v1690_v57  ;;  %v1494_v0 = vadd.f32 %v2679_v54, %v3231_v4 }
 0x292   : > { %v1485_v58 = vpop.f32.mrf.mxu0 }
 0x293   : > { %v1746_v59 = vpack.c.bf16 %v1689_v56, %v1688_v55  ;;  %v1486_v62 = vadd.f32 %v3231_v4, %v1485_v58  ;;  %v1694_v7 = vmax.f32 %v1494_v0, 0.0 }
 0x294   : > { %v2680_v61 = vpop.f32.mrf.mxu0 }
 0x295   : > { %v1497_v63 = vadd.f32 %v2680_v61, %v3231_v4  ;;  %2753 = vmatprep.mubr.bf16.mxu1 %v1746_v59  ;;  %v1692_v6 = vmax.f32 %v1486_v62, 0.0 }
 0x296   : > { %v1488_v1 = vpop.f32.mrf.mxu0  ;;  %2754 = vmatmul.mubr.bf16.gmra.mxu1 %v1747_v60 }
 0x297   : > { %v1489_v2 = vadd.f32 %v3231_v4, %v1488_v1  ;;  %v1695_v3 = vmax.f32 %v1497_v63, 0.0 }
 0x298   : > { %v2683_v5 = vpop.f32.mrf.mxu0 }
 0x299   : > { %v1693_v25 = vmax.f32 %v1489_v2, 0.0  ;;  %v1749_v10 = vpack.c.bf16 %v1695_v3, %v1694_v7  ;;  %v1510_v14 = vadd.f32 %v2683_v5, %v3231_v4 }
 0x29a   : > { %v1501_v8 = vpop.f32.mrf.mxu0 }
 0x29b   : > { %v1748_v9 = vpack.c.bf16 %v1693_v25, %v1692_v6  ;;  %v1502_v12 = vadd.f32 %v3231_v4, %v1501_v8  ;;  %v1698_v21 = vmax.f32 %v1510_v14, 0.0 }
 0x29c   : > { %v2684_v11 = vpop.f32.mrf.mxu0 }
 0x29d   : > { %v1513_v13 = vadd.f32 %v2684_v11, %v3231_v4  ;;  %2757 = vmatprep.mubr.bf16.mxu1 %v1748_v9  ;;  %v1696_v19 = vmax.f32 %v1502_v12, 0.0 }
 0x29e   : > { %v1504_v15 = vpop.f32.mrf.mxu0  ;;  %2758 = vmatmul.mubr.bf16.gmra.mxu1 %v1749_v10 }
 0x29f   : > { %v1505_v16 = vadd.f32 %v3231_v4, %v1504_v15  ;;  %v1699_v17 = vmax.f32 %v1513_v13, 0.0 }
 0x2a0   : > { %v2687_v18 = vpop.f32.mrf.mxu0 }
 0x2a1   : > { %v1697_v20 = vmax.f32 %v1505_v16, 0.0  ;;  %v1751_v47 = vpack.c.bf16 %v1699_v17, %v1698_v21  ;;  %v1526_v28 = vadd.f32 %v2687_v18, %v3231_v4 }
 0x2a2   : > { %v1517_v22 = vpop.f32.mrf.mxu0 }
 0x2a3   : > { %v1750_v23 = vpack.c.bf16 %v1697_v20, %v1696_v19  ;;  %v1518_v26 = vadd.f32 %v3231_v4, %v1517_v22  ;;  %v1702_v35 = vmax.f32 %v1526_v28, 0.0 }
 0x2a4   : > { %v2688_v24 = vpop.f32.mrf.mxu0 }
 0x2a5   : > { %v1529_v27 = vadd.f32 %v2688_v24, %v3231_v4  ;;  %2761 = vmatprep.mubr.bf16.mxu1 %v1750_v23  ;;  %v1700_v33 = vmax.f32 %v1518_v26, 0.0 }
 0x2a6   : > { %v1520_v29 = vpop.f32.mrf.mxu0  ;;  %2762 = vmatmul.mubr.bf16.gmra.mxu1 %v1751_v47 }
 0x2a7   : > { %v1521_v30 = vadd.f32 %v3231_v4, %v1520_v29  ;;  %v1703_v31 = vmax.f32 %v1529_v27, 0.0 }
 0x2a8   : > { %v2691_v32 = vpop.f32.mrf.mxu0 }
 0x2a9   : > { %v1701_v34 = vmax.f32 %v1521_v30, 0.0  ;;  %v1753_v38 = vpack.c.bf16 %v1703_v31, %v1702_v35  ;;  %v1542_v42 = vadd.f32 %v2691_v32, %v3231_v4 }
 0x2aa   : > { %v1533_v36 = vpop.f32.mrf.mxu0 }
 0x2ab   : > { %v1752_v37 = vpack.c.bf16 %v1701_v34, %v1700_v33  ;;  %v1534_v40 = vadd.f32 %v3231_v4, %v1533_v36  ;;  %v1706_v50 = vmax.f32 %v1542_v42, 0.0 }
 0x2ac   : > { %v2692_v39 = vpop.f32.mrf.mxu0 }
 0x2ad   : > { %v1545_v41 = vadd.f32 %v2692_v39, %v3231_v4  ;;  %2765 = vmatprep.mubr.bf16.mxu1 %v1752_v37  ;;  %v1704_v48 = vmax.f32 %v1534_v40, 0.0 }
 0x2ae   : > { %v1536_v43 = vpop.f32.mrf.mxu0  ;;  %2766 = vmatmul.mubr.bf16.gmra.mxu1 %v1753_v38 }
 0x2af   : > { %v1537_v44 = vadd.f32 %v3231_v4, %v1536_v43  ;;  %v1707_v45 = vmax.f32 %v1545_v41, 0.0 }
 0x2b0   : > { %v2695_v46 = vpop.f32.mrf.mxu0 }
 0x2b1   : > { %v1705_v49 = vmax.f32 %v1537_v44, 0.0  ;;  %v1755_v53 = vpack.c.bf16 %v1707_v45, %v1706_v50  ;;  %v1558_v57 = vadd.f32 %v2695_v46, %v3231_v4 }
 0x2b2   : > { %v1549_v51 = vpop.f32.mrf.mxu0 }
 0x2b3   : > { %v1754_v52 = vpack.c.bf16 %v1705_v49, %v1704_v48  ;;  %v1550_v55 = vadd.f32 %v3231_v4, %v1549_v51  ;;  %v1710_v0 = vmax.f32 %v1558_v57, 0.0 }
 0x2b4   : > { %v2696_v54 = vpop.f32.mrf.mxu0 }
 0x2b5   : > { %v1561_v56 = vadd.f32 %v2696_v54, %v3231_v4  ;;  %2769 = vmatprep.mubr.bf16.mxu1 %v1754_v52  ;;  %v1708_v62 = vmax.f32 %v1550_v55, 0.0 }
 0x2b6   : > { %v1552_v58 = vpop.f32.mrf.mxu0  ;;  %2770 = vmatmul.mubr.bf16.gmra.mxu1 %v1755_v53 }
 0x2b7   : > { %v1553_v59 = vadd.f32 %v3231_v4, %v1552_v58  ;;  %v1711_v60 = vmax.f32 %v1561_v56, 0.0 }
 0x2b8   : > { %v2699_v61 = vpop.f32.mrf.mxu0 }
 0x2b9   : > { %v1709_v63 = vmax.f32 %v1553_v59, 0.0  ;;  %v1757_v3 = vpack.c.bf16 %v1711_v60, %v1710_v0  ;;  %v1574_v7 = vadd.f32 %v2699_v61, %v3231_v4 }
 0x2ba   : > { %v1565_v1 = vpop.f32.mrf.mxu0 }
 0x2bb   : > { %v1756_v2 = vpack.c.bf16 %v1709_v63, %v1708_v62  ;;  %v1566_v6 = vadd.f32 %v3231_v4, %v1565_v1  ;;  %v1714_v14 = vmax.f32 %v1574_v7, 0.0 }
 0x2bc   : > { %v2700_v5 = vpop.f32.mrf.mxu0 }
 0x2bd   : > { %v1577_v25 = vadd.f32 %v2700_v5, %v3231_v4  ;;  %2773 = vmatprep.mubr.bf16.mxu1 %v1756_v2  ;;  %v1712_v12 = vmax.f32 %v1566_v6, 0.0 }
 0x2be   : > { %v1568_v8 = vpop.f32.mrf.mxu0  ;;  %2774 = vmatmul.mubr.bf16.gmra.mxu1 %v1757_v3 }
 0x2bf   : > { %v1569_v9 = vadd.f32 %v3231_v4, %v1568_v8  ;;  %v1715_v10 = vmax.f32 %v1577_v25, 0.0 }
 0x2c0   : > { %v2703_v11 = vpop.f32.mrf.mxu0 }
 0x2c1   : > { %v1713_v13 = vmax.f32 %v1569_v9, 0.0  ;;  %v1759_v17 = vpack.c.bf16 %v1715_v10, %v1714_v14  ;;  %v1590_v21 = vadd.f32 %v2703_v11, %v3231_v4 }
 0x2c2   : > { %v1581_v15 = vpop.f32.mrf.mxu0 }
 0x2c3   : > { %v1758_v16 = vpack.c.bf16 %v1713_v13, %v1712_v12  ;;  %v1582_v19 = vadd.f32 %v3231_v4, %v1581_v15  ;;  %v1718_v28 = vmax.f32 %v1590_v21, 0.0 }
 0x2c4   : > { %v2704_v18 = vpop.f32.mrf.mxu0 }
 0x2c5   : > { %v1593_v20 = vadd.f32 %v2704_v18, %v3231_v4  ;;  %2777 = vmatprep.mubr.bf16.mxu1 %v1758_v16  ;;  %v1716_v26 = vmax.f32 %v1582_v19, 0.0 }
 0x2c6   : > { %v1584_v22 = vpop.f32.mrf.mxu0  ;;  %2778 = vmatmul.mubr.bf16.gmra.mxu1 %v1759_v17 }
 0x2c7   : > { %v1585_v23 = vadd.f32 %v3231_v4, %v1584_v22  ;;  %v1719_v47 = vmax.f32 %v1593_v20, 0.0 }
 0x2c8   : > { %v2707_v24 = vpop.f32.mrf.mxu0 }
 0x2c9   : > { %v1717_v27 = vmax.f32 %v1585_v23, 0.0  ;;  %v1761_v31 = vpack.c.bf16 %v1719_v47, %v1718_v28  ;;  %v1606_v35 = vadd.f32 %v2707_v24, %v3231_v4 }
 0x2ca   : > { %v1597_v29 = vpop.f32.mrf.mxu0 }
 0x2cb   : > { %v1760_v30 = vpack.c.bf16 %v1717_v27, %v1716_v26  ;;  %v1598_v33 = vadd.f32 %v3231_v4, %v1597_v29  ;;  %v1722_v42 = vmax.f32 %v1606_v35, 0.0 }
 0x2cc   : > { %v2708_v32 = vpop.f32.mrf.mxu0 }
 0x2cd   : > { %v1609_v34 = vadd.f32 %v2708_v32, %v3231_v4  ;;  %2781 = vmatprep.mubr.bf16.mxu1 %v1760_v30  ;;  %v1720_v40 = vmax.f32 %v1598_v33, 0.0 }
 0x2ce   : > { %v1600_v36 = vpop.f32.mrf.mxu0  ;;  %2782 = vmatmul.mubr.bf16.gmra.mxu1 %v1761_v31 }
 0x2cf   : > { %v1601_v37 = vadd.f32 %v3231_v4, %v1600_v36  ;;  %v1723_v38 = vmax.f32 %v1609_v34, 0.0 }
 0x2d0   : > { %v2711_v39 = vpop.f32.mrf.mxu0 }
 0x2d1   : > { %v1721_v41 = vmax.f32 %v1601_v37, 0.0  ;;  %v1763_v45 = vpack.c.bf16 %v1723_v38, %v1722_v42  ;;  %v1622_v50 = vadd.f32 %v2711_v39, %v3231_v4  ;;  %v3300_v37 = vld [vmem:[%s3445_s5] ss:$0 sm:$0xff] }
 0x2d2   : > { %v1613_v43 = vpop.f32.mrf.mxu0 }
 0x2d3   : > { %v1762_v44 = vpack.c.bf16 %v1721_v41, %v1720_v40  ;;  %v1614_v48 = vadd.f32 %v3231_v4, %v1613_v43  ;;  %v1726_v57 = vmax.f32 %v1622_v50, 0.0 }
 0x2d4   : > { %v2712_v46 = vpop.f32.mrf.mxu0 }
 0x2d5   : > { %v1625_v49 = vadd.f32 %v2712_v46, %v3231_v4  ;;  %2785 = vmatprep.mubr.bf16.mxu1 %v1762_v44  ;;  %v1724_v55 = vmax.f32 %v1614_v48, 0.0 }
 0x2d6   : > { %v1616_v51 = vpop.f32.mrf.mxu0  ;;  %2786 = vmatmul.mubr.bf16.gmra.mxu1 %v1763_v45 }
 0x2d7   : > { %v1617_v52 = vadd.f32 %v3231_v4, %v1616_v51  ;;  %v1727_v53 = vmax.f32 %v1625_v49, 0.0 }
 0x2d8   : > { %v2715_v54 = vpop.f32.mrf.mxu0 }
 0x2d9   : > { %v1725_v56 = vmax.f32 %v1617_v52, 0.0  ;;  %v1765_v60 = vpack.c.bf16 %v1727_v53, %v1726_v57  ;;  %v1638_v0 = vadd.f32 %v2715_v54, %v3231_v4 }
 0x2da   : > { %v1629_v58 = vpop.f32.mrf.mxu0 }
 0x2db   : > { %v1764_v59 = vpack.c.bf16 %v1725_v56, %v1724_v55  ;;  %v1630_v62 = vadd.f32 %v3231_v4, %v1629_v58  ;;  %v1730_v7 = vmax.f32 %v1638_v0, 0.0 }
 0x2dc   : > { %v2716_v61 = vpop.f32.mrf.mxu0 }
 0x2dd   : > { %v1641_v63 = vadd.f32 %v2716_v61, %v3231_v4  ;;  %2789 = vmatprep.mubr.bf16.mxu1 %v1764_v59  ;;  %v1728_v6 = vmax.f32 %v1630_v62, 0.0 }
 0x2de   : > { %v1632_v1 = vpop.f32.mrf.mxu0  ;;  %2790 = vmatmul.mubr.bf16.gmra.mxu1 %v1765_v60 }
 0x2df   : > { %v1633_v2 = vadd.f32 %v3231_v4, %v1632_v1  ;;  %v1731_v3 = vmax.f32 %v1641_v63, 0.0 }
 0x2e0   : > { %v2719_v5 = vpop.f32.mrf.mxu0 }
 0x2e1   : > { %v1729_v25 = vmax.f32 %v1633_v2, 0.0  ;;  %v1767_v10 = vpack.c.bf16 %v1731_v3, %v1730_v7  ;;  %v1654_v14 = vadd.f32 %v2719_v5, %v3231_v4 }
 0x2e2   : > { %v1645_v8 = vpop.f32.mrf.mxu0 }
 0x2e3   : > { %v1766_v9 = vpack.c.bf16 %v1729_v25, %v1728_v6  ;;  %v1646_v12 = vadd.f32 %v3231_v4, %v1645_v8  ;;  %v1734_v21 = vmax.f32 %v1654_v14, 0.0 }
 0x2e4   : > { %v2720_v11 = vpop.f32.mrf.mxu0 }
 0x2e5   : > { %v1657_v13 = vadd.f32 %v2720_v11, %v3231_v4  ;;  %2793 = vmatprep.mubr.bf16.mxu1 %v1766_v9  ;;  %v1732_v19 = vmax.f32 %v1646_v12, 0.0 }
 0x2e6   : > { %v1648_v15 = vpop.f32.mrf.mxu0  ;;  %2794 = vmatmul.mubr.bf16.gmra.mxu1 %v1767_v10 }
 0x2e7   : > { %v1649_v16 = vadd.f32 %v3231_v4, %v1648_v15  ;;  %v1735_v17 = vmax.f32 %v1657_v13, 0.0 }
 0x2e8   : > { %v2723_v18 = vpop.f32.mrf.mxu0 }
 0x2e9   : > { %v1733_v20 = vmax.f32 %v1649_v16, 0.0  ;;  %v1769_v47 = vpack.c.bf16 %v1735_v17, %v1734_v21  ;;  %v1670_v28 = vadd.f32 %v2723_v18, %v3231_v4 }
 0x2ea   : > { %v1661_v22 = vpop.f32.mrf.mxu0 }
 0x2eb   : > { %v1768_v23 = vpack.c.bf16 %v1733_v20, %v1732_v19  ;;  %v1662_v26 = vadd.f32 %v3231_v4, %v1661_v22  ;;  %v1738_v34 = vmax.f32 %v1670_v28, 0.0 }
 0x2ec   : > { %v2724_v24 = vpop.f32.mrf.mxu0 }
 0x2ed   : > { %v1673_v27 = vadd.f32 %v2724_v24, %v3231_v4  ;;  %2797 = vmatprep.mubr.bf16.mxu1 %v1768_v23  ;;  %v1736_v32 = vmax.f32 %v1662_v26, 0.0 }
 0x2ee   : > { %v1664_v29 = vpop.f32.mrf.mxu0  ;;  %2798 = vmatmul.mubr.bf16.gmra.mxu1 %v1769_v47 }
 0x2ef   : > { %v1665_v30 = vadd.f32 %v3231_v4, %v1664_v29  ;;  %v1739_v31 = vmax.f32 %v1673_v27, 0.0 }
 0x2f1   : > { %v1737_v33 = vmax.f32 %v1665_v30, 0.0  ;;  %v1771_v36 = vpack.c.bf16 %v1739_v31, %v1738_v34 }
 0x2f3   : > { %v1770_v35 = vpack.c.bf16 %v1737_v33, %v1736_v32 }
 0x2f5   : > { %2801 = vmatprep.mubr.bf16.mxu1 %v1770_v35 }
 0x2f6   : > { %2802 = vmatmul.mubr.bf16.gmra.mxu1 %v1771_v36 }
 0x33e   : > { %v2743_v4 = vpop.f32.mrf.mxu0 }
 0x33f   : > { %v1886_v38 = vadd.f32 %v2743_v4, %v3300_v37 }
 0x340   : > { %v1877_v39 = vpop.f32.mrf.mxu0 }
 0x341   : > { %2134 = vst [vmem:[%s3307_s26 + $0x10] sm:$0xff] %v1886_v38  ;;  %v1878_v40 = vadd.f32 %v3300_v37, %v1877_v39 }
 0x342   : > { %v2744_v41 = vpop.f32.mrf.mxu0 }
 0x343   : > { %2132 = vst [vmem:[%s3307_s26] sm:$0xff] %v1878_v40  ;;  %v1889_v42 = vadd.f32 %v2744_v41, %v3300_v37 }
 0x344   : > { %v1880_v43 = vpop.f32.mrf.mxu0 }
 0x345   : > { %2135 = vst [vmem:[%s3307_s26 + $0x18] sm:$0xff] %v1889_v42  ;;  %v1881_v44 = vadd.f32 %v3300_v37, %v1880_v43 }
 0x346   : > { %v2747_v45 = vpop.f32.mrf.mxu1 }
 0x347   : > { %2133 = vst [vmem:[%s3307_s26 + $0x8] sm:$0xff] %v1881_v44  ;;  %v1902_v46 = vadd.f32 %v2747_v45, %v3300_v37 }
 0x348   : > { %v1893_v48 = vpop.f32.mrf.mxu1 }
 0x349   : > { %2138 = vst [vmem:[%s3307_s26 + $0x30] sm:$0xff] %v1902_v46  ;;  %v1894_v49 = vadd.f32 %v3300_v37, %v1893_v48 }
 0x34a   : > { %v2748_v50 = vpop.f32.mrf.mxu1 }
 0x34b   : > { %2136 = vst [vmem:[%s3307_s26 + $0x20] sm:$0xff] %v1894_v49  ;;  %v1905_v51 = vadd.f32 %v2748_v50, %v3300_v37 }
 0x34c   : > { %v1896_v52 = vpop.f32.mrf.mxu1 }
 0x34d   : > { %2139 = vst [vmem:[%s3307_s26 + $0x38] sm:$0xff] %v1905_v51  ;;  %v1897_v53 = vadd.f32 %v3300_v37, %v1896_v52 }
 0x34e   : > { %v2751_v54 = vpop.f32.mrf.mxu1 }
 0x34f   : > { %2137 = vst [vmem:[%s3307_s26 + $0x28] sm:$0xff] %v1897_v53  ;;  %v1918_v55 = vadd.f32 %v2751_v54, %v3300_v37 }
 0x350   : > { %v1909_v56 = vpop.f32.mrf.mxu1 }
 0x351   : > { %2142 = vst [vmem:[%s3307_s26 + $0x50] sm:$0xff] %v1918_v55  ;;  %v1910_v57 = vadd.f32 %v3300_v37, %v1909_v56 }
 0x352   : > { %v2752_v58 = vpop.f32.mrf.mxu1 }
 0x353   : > { %2140 = vst [vmem:[%s3307_s26 + $0x40] sm:$0xff] %v1910_v57  ;;  %v1921_v59 = vadd.f32 %v2752_v58, %v3300_v37 }
 0x354   : > { %v1912_v60 = vpop.f32.mrf.mxu1 }
 0x355   : > { %2143 = vst [vmem:[%s3307_s26 + $0x58] sm:$0xff] %v1921_v59  ;;  %v1913_v61 = vadd.f32 %v3300_v37, %v1912_v60 }
 0x356   : > { %v2755_v62 = vpop.f32.mrf.mxu1 }
 0x357   : > { %2141 = vst [vmem:[%s3307_s26 + $0x48] sm:$0xff] %v1913_v61  ;;  %v1934_v63 = vadd.f32 %v2755_v62, %v3300_v37 }
 0x358   : > { %v1925_v0 = vpop.f32.mrf.mxu1 }
 0x359   : > { %2146 = vst [vmem:[%s3307_s26 + $0x70] sm:$0xff] %v1934_v63  ;;  %v1926_v1 = vadd.f32 %v3300_v37, %v1925_v0 }
 0x35a   : > { %v2756_v2 = vpop.f32.mrf.mxu1 }
 0x35b   : > { %2144 = vst [vmem:[%s3307_s26 + $0x60] sm:$0xff] %v1926_v1  ;;  %v1937_v3 = vadd.f32 %v2756_v2, %v3300_v37 }
 0x35c   : > { %v1928_v5 = vpop.f32.mrf.mxu1 }
 0x35d   : > { %2147 = vst [vmem:[%s3307_s26 + $0x78] sm:$0xff] %v1937_v3  ;;  %v1929_v6 = vadd.f32 %v3300_v37, %v1928_v5 }
 0x35e   : > { %v2759_v25 = vpop.f32.mrf.mxu1 }
 0x35f   : > { %2145 = vst [vmem:[%s3307_s26 + $0x68] sm:$0xff] %v1929_v6  ;;  %v1950_v7 = vadd.f32 %v2759_v25, %v3300_v37 }
 0x360   : > { %v1941_v8 = vpop.f32.mrf.mxu1 }
 0x361   : > { %2150 = vst [vmem:[%s3307_s26 + $0x90] sm:$0xff] %v1950_v7  ;;  %v1942_v9 = vadd.f32 %v3300_v37, %v1941_v8 }
 0x362   : > { %v2760_v10 = vpop.f32.mrf.mxu1 }
 0x363   : > { %2148 = vst [vmem:[%s3307_s26 + $0x80] sm:$0xff] %v1942_v9  ;;  %v1953_v11 = vadd.f32 %v2760_v10, %v3300_v37 }
 0x364   : > { %v1944_v12 = vpop.f32.mrf.mxu1 }
 0x365   : > { %2151 = vst [vmem:[%s3307_s26 + $0x98] sm:$0xff] %v1953_v11  ;;  %v1945_v13 = vadd.f32 %v3300_v37, %v1944_v12 }
 0x366   : > { %v2763_v14 = vpop.f32.mrf.mxu1 }
 0x367   : > { %2149 = vst [vmem:[%s3307_s26 + $0x88] sm:$0xff] %v1945_v13  ;;  %v1966_v15 = vadd.f32 %v2763_v14, %v3300_v37 }
 0x368   : > { %v1957_v16 = vpop.f32.mrf.mxu1 }
 0x369   : > { %2154 = vst [vmem:[%s3307_s26 + $0xb0] sm:$0xff] %v1966_v15  ;;  %v1958_v17 = vadd.f32 %v3300_v37, %v1957_v16 }
 0x36a   : > { %v2764_v18 = vpop.f32.mrf.mxu1 }
 0x36b   : > { %2152 = vst [vmem:[%s3307_s26 + $0xa0] sm:$0xff] %v1958_v17  ;;  %v1969_v19 = vadd.f32 %v2764_v18, %v3300_v37 }
 0x36c   : > { %v1960_v20 = vpop.f32.mrf.mxu1 }
 0x36d   : > { %2155 = vst [vmem:[%s3307_s26 + $0xb8] sm:$0xff] %v1969_v19  ;;  %v1961_v21 = vadd.f32 %v3300_v37, %v1960_v20 }
 0x36e   : > { %v2767_v22 = vpop.f32.mrf.mxu1 }
 0x36f   : > { %2153 = vst [vmem:[%s3307_s26 + $0xa8] sm:$0xff] %v1961_v21  ;;  %v1982_v23 = vadd.f32 %v2767_v22, %v3300_v37 }
 0x370   : > { %v1973_v47 = vpop.f32.mrf.mxu1 }
 0x371   : > { %2158 = vst [vmem:[%s3307_s26 + $0xd0] sm:$0xff] %v1982_v23  ;;  %v1974_v24 = vadd.f32 %v3300_v37, %v1973_v47 }
 0x372   : > { %v2768_v26 = vpop.f32.mrf.mxu1 }
 0x373   : > { %2156 = vst [vmem:[%s3307_s26 + $0xc0] sm:$0xff] %v1974_v24  ;;  %v1985_v27 = vadd.f32 %v2768_v26, %v3300_v37 }
 0x374   : > { %v1976_v28 = vpop.f32.mrf.mxu1 }
 0x375   : > { %2159 = vst [vmem:[%s3307_s26 + $0xd8] sm:$0xff] %v1985_v27  ;;  %v1977_v29 = vadd.f32 %v3300_v37, %v1976_v28 }
 0x376   : > { %v2771_v30 = vpop.f32.mrf.mxu1 }
 0x377   : > { %2157 = vst [vmem:[%s3307_s26 + $0xc8] sm:$0xff] %v1977_v29  ;;  %v1998_v31 = vadd.f32 %v2771_v30, %v3300_v37 }
 0x378   : > { %v1989_v32 = vpop.f32.mrf.mxu1 }
 0x379   : > { %2162 = vst [vmem:[%s3307_s26 + $0xf0] sm:$0xff] %v1998_v31  ;;  %v1990_v33 = vadd.f32 %v3300_v37, %v1989_v32 }
 0x37a   : > { %v2772_v34 = vpop.f32.mrf.mxu1 }
 0x37b   : > { %2160 = vst [vmem:[%s3307_s26 + $0xe0] sm:$0xff] %v1990_v33  ;;  %v2001_v35 = vadd.f32 %v2772_v34, %v3300_v37 }
 0x37c   : > { %v1992_v36 = vpop.f32.mrf.mxu1 }
 0x37d   : > { %2163 = vst [vmem:[%s3307_s26 + $0xf8] sm:$0xff] %v2001_v35  ;;  %v1993_v4 = vadd.f32 %v3300_v37, %v1992_v36 }
 0x37e   : > { %v2775_v38 = vpop.f32.mrf.mxu1 }
 0x37f   : > { %2161 = vst [vmem:[%s3307_s26 + $0xe8] sm:$0xff] %v1993_v4  ;;  %v2014_v39 = vadd.f32 %v2775_v38, %v3300_v37 }
 0x380   : > { %v2005_v40 = vpop.f32.mrf.mxu1 }
 0x381   : > { %2166 = vst [vmem:[%s3307_s26 + $0x110] sm:$0xff] %v2014_v39  ;;  %v2006_v41 = vadd.f32 %v3300_v37, %v2005_v40 }
 0x382   : > { %v2776_v42 = vpop.f32.mrf.mxu1 }
 0x383   : > { %2164 = vst [vmem:[%s3307_s26 + $0x100] sm:$0xff] %v2006_v41  ;;  %v2017_v43 = vadd.f32 %v2776_v42, %v3300_v37 }
 0x384   : > { %v2008_v44 = vpop.f32.mrf.mxu1 }
 0x385   : > { %2167 = vst [vmem:[%s3307_s26 + $0x118] sm:$0xff] %v2017_v43  ;;  %v2009_v45 = vadd.f32 %v3300_v37, %v2008_v44 }
 0x386   : > { %v2779_v46 = vpop.f32.mrf.mxu1 }
 0x387   : > { %2165 = vst [vmem:[%s3307_s26 + $0x108] sm:$0xff] %v2009_v45  ;;  %v2030_v48 = vadd.f32 %v2779_v46, %v3300_v37 }
 0x388   : > { %v2021_v49 = vpop.f32.mrf.mxu1 }
 0x389   : > { %2170 = vst [vmem:[%s3307_s26 + $0x130] sm:$0xff] %v2030_v48  ;;  %v2022_v50 = vadd.f32 %v3300_v37, %v2021_v49 }
 0x38a   : > { %v2780_v51 = vpop.f32.mrf.mxu1 }
 0x38b   : > { %2168 = vst [vmem:[%s3307_s26 + $0x120] sm:$0xff] %v2022_v50  ;;  %v2033_v52 = vadd.f32 %v2780_v51, %v3300_v37 }
 0x38c   : > { %v2024_v53 = vpop.f32.mrf.mxu1 }
 0x38d   : > { %2171 = vst [vmem:[%s3307_s26 + $0x138] sm:$0xff] %v2033_v52  ;;  %v2025_v54 = vadd.f32 %v3300_v37, %v2024_v53 }
 0x38e   : > { %v2783_v55 = vpop.f32.mrf.mxu1 }
 0x38f   : > { %2169 = vst [vmem:[%s3307_s26 + $0x128] sm:$0xff] %v2025_v54  ;;  %v2046_v56 = vadd.f32 %v2783_v55, %v3300_v37 }
 0x390   : > { %v2037_v57 = vpop.f32.mrf.mxu1 }
 0x391   : > { %2174 = vst [vmem:[%s3307_s26 + $0x150] sm:$0xff] %v2046_v56  ;;  %v2038_v58 = vadd.f32 %v3300_v37, %v2037_v57 }
 0x392   : > { %v2784_v59 = vpop.f32.mrf.mxu1 }
 0x393   : > { %2172 = vst [vmem:[%s3307_s26 + $0x140] sm:$0xff] %v2038_v58  ;;  %v2049_v60 = vadd.f32 %v2784_v59, %v3300_v37 }
 0x394   : > { %v2040_v61 = vpop.f32.mrf.mxu1 }
 0x395   : > { %2175 = vst [vmem:[%s3307_s26 + $0x158] sm:$0xff] %v2049_v60  ;;  %v2041_v62 = vadd.f32 %v3300_v37, %v2040_v61 }
 0x396   : > { %v2787_v63 = vpop.f32.mrf.mxu1 }
 0x397   : > { %2173 = vst [vmem:[%s3307_s26 + $0x148] sm:$0xff] %v2041_v62  ;;  %v2062_v0 = vadd.f32 %v2787_v63, %v3300_v37 }
 0x398   : > { %v2053_v1 = vpop.f32.mrf.mxu1 }
 0x399   : > { %2178 = vst [vmem:[%s3307_s26 + $0x170] sm:$0xff] %v2062_v0  ;;  %v2054_v2 = vadd.f32 %v3300_v37, %v2053_v1 }
 0x39a   : > { %v2788_v3 = vpop.f32.mrf.mxu1 }
 0x39b   : > { %2176 = vst [vmem:[%s3307_s26 + $0x160] sm:$0xff] %v2054_v2  ;;  %v2065_v5 = vadd.f32 %v2788_v3, %v3300_v37 }
 0x39c   : > { %v2056_v6 = vpop.f32.mrf.mxu1 }
 0x39d   : > { %2179 = vst [vmem:[%s3307_s26 + $0x178] sm:$0xff] %v2065_v5  ;;  %v2057_v25 = vadd.f32 %v3300_v37, %v2056_v6 }
 0x39e   : > { %v2791_v7 = vpop.f32.mrf.mxu1 }
 0x39f   : > { %2177 = vst [vmem:[%s3307_s26 + $0x168] sm:$0xff] %v2057_v25  ;;  %v2078_v8 = vadd.f32 %v2791_v7, %v3300_v37 }
 0x3a0   : > { %v2069_v9 = vpop.f32.mrf.mxu1 }
 0x3a1   : > { %2182 = vst [vmem:[%s3307_s26 + $0x190] sm:$0xff] %v2078_v8  ;;  %v2070_v10 = vadd.f32 %v3300_v37, %v2069_v9 }
 0x3a2   : > { %v2792_v11 = vpop.f32.mrf.mxu1 }
 0x3a3   : > { %2180 = vst [vmem:[%s3307_s26 + $0x180] sm:$0xff] %v2070_v10  ;;  %v2081_v12 = vadd.f32 %v2792_v11, %v3300_v37 }
 0x3a4   : > { %v2072_v13 = vpop.f32.mrf.mxu1 }
 0x3a5   : > { %2183 = vst [vmem:[%s3307_s26 + $0x198] sm:$0xff] %v2081_v12  ;;  %v2073_v14 = vadd.f32 %v3300_v37, %v2072_v13 }
 0x3a6   : > { %v2795_v15 = vpop.f32.mrf.mxu1 }
 0x3a7   : > { %2181 = vst [vmem:[%s3307_s26 + $0x188] sm:$0xff] %v2073_v14  ;;  %v2094_v16 = vadd.f32 %v2795_v15, %v3300_v37 }
 0x3a8   : > { %v2085_v17 = vpop.f32.mrf.mxu1 }
 0x3a9   : > { %2186 = vst [vmem:[%s3307_s26 + $0x1b0] sm:$0xff] %v2094_v16  ;;  %v2086_v18 = vadd.f32 %v3300_v37, %v2085_v17 }
 0x3aa   : > { %v2796_v19 = vpop.f32.mrf.mxu1 }
 0x3ab   : > { %2184 = vst [vmem:[%s3307_s26 + $0x1a0] sm:$0xff] %v2086_v18  ;;  %v2097_v20 = vadd.f32 %v2796_v19, %v3300_v37 }
 0x3ac   : > { %v2088_v21 = vpop.f32.mrf.mxu1 }
 0x3ad   : > { %2187 = vst [vmem:[%s3307_s26 + $0x1b8] sm:$0xff] %v2097_v20  ;;  %v2089_v22 = vadd.f32 %v3300_v37, %v2088_v21 }
 0x3ae   : > { %v2799_v23 = vpop.f32.mrf.mxu1 }
 0x3af   : > { %2185 = vst [vmem:[%s3307_s26 + $0x1a8] sm:$0xff] %v2089_v22  ;;  %v2110_v47 = vadd.f32 %v2799_v23, %v3300_v37 }
 0x3b0   : > { %v2101_v24 = vpop.f32.mrf.mxu1 }
 0x3b1   : > { %2190 = vst [vmem:[%s3307_s26 + $0x1d0] sm:$0xff] %v2110_v47  ;;  %v2102_v26 = vadd.f32 %v3300_v37, %v2101_v24 }
 0x3b2   : > { %v2800_v27 = vpop.f32.mrf.mxu1 }
 0x3b3   : > { %2188 = vst [vmem:[%s3307_s26 + $0x1c0] sm:$0xff] %v2102_v26  ;;  %v2113_v28 = vadd.f32 %v2800_v27, %v3300_v37 }
 0x3b4   : > { %v2104_v29 = vpop.f32.mrf.mxu1 }
 0x3b5   : > { %2191 = vst [vmem:[%s3307_s26 + $0x1d8] sm:$0xff] %v2113_v28  ;;  %v2105_v30 = vadd.f32 %v3300_v37, %v2104_v29 }
 0x3b6   : > { %v2803_v31 = vpop.f32.mrf.mxu1 }
 0x3b7   : > { %2189 = vst [vmem:[%s3307_s26 + $0x1c8] sm:$0xff] %v2105_v30  ;;  %v2126_v32 = vadd.f32 %v2803_v31, %v3300_v37 }
 0x3b8   : > { %v2117_v33 = vpop.f32.mrf.mxu1 }
 0x3b9   : > { %2194 = vst [vmem:[%s3307_s26 + $0x1f0] sm:$0xff] %v2126_v32  ;;  %v2118_v34 = vadd.f32 %v3300_v37, %v2117_v33 }
 0x3ba   : > { %v2804_v35 = vpop.f32.mrf.mxu1 }
 0x3bb   : > { %2192 = vst [vmem:[%s3307_s26 + $0x1e0] sm:$0xff] %v2118_v34  ;;  %v2129_v36 = vadd.f32 %v2804_v35, %v3300_v37 }
 0x3bc   : > { %v2120_v4 = vpop.f32.mrf.mxu1 }
 0x3bd   : > { %2195 = vst [vmem:[%s3307_s26 + $0x1f8] sm:$0xff] %v2129_v36  ;;  %v2121_v38 = vadd.f32 %v3300_v37, %v2120_v4 }
 0x3bf   : > { %2193 = vst [vmem:[%s3307_s26 + $0x1e8] sm:$0xff] %v2121_v38 }
 0x3c0 PF: > { %s16_s21 = sadd.s32 1, %s2861_s21  }
 0x3c1   : > { %p13_p4 = scmp.ge.s32.totalorder %s16_s21, 4  }
 0x3c3   :  { %15 = sbr.rel (!%p13_p4) target bundleno = 1 (0x1), region = 77 }

</bundles_post_ra>
